<compile_context>
chip_gen: v5e
topology: v5e:2x2
jax: 0.10.0
libtpu: 0.0.40
codegen_flags: <defaults>
</compile_context>

<pallas_src>
import math

import jax
import jax.numpy as jnp
import numpy as np
from jax.experimental import pallas as pl
from jax.experimental.pallas import tpu as pltpu


# ----------------------------------------------------------------------------
# Fused kernel: whole PepperNetCConvInv forward for a block of TB elements
# ----------------------------------------------------------------------------
def _fused_kernel(nan_ref,                                   # SMEM scalar prefetch
                  x_ref, y_ref, ecf_ref, ecb_ref,            # per-block activations
                  w_ef_ref, b_ef_ref, wc_f_ref, w_df_ref, b_df_ref,
                  w_db_ref, b_db_ref, wc_b_ref, w_eb_ref, b_eb_ref,
                  x_out_ref, y_out_ref, z_out_ref,           # outputs
                  pad_ref):                                   # shared row-padded scratch
    tb, H, L_in = x_ref.shape
    L_out = y_ref.shape[2]
    L_enc = wc_f_ref.shape[0]
    HP = H + 2                        # rows per element inside the padded slab
    M = tb * HP - 2                   # flat conv-output rows (incl. junk rows)
    cdt = pad_ref.dtype               # bf16 matmul-operand dtype
    f32 = jnp.float32

    # Zero the per-element top/bottom border rows once per step (full lane
    # width).  Interior rows are rewritten by every stage; borders stay zero.
    zrow = jnp.zeros((1, pad_ref.shape[1]), cdt)
    for t in range(tb):
        pad_ref[t * HP:t * HP + 1, :] = zrow
        pad_ref[t * HP + HP - 1:t * HP + HP, :] = zrow

    def fill(t, val, L):
        # write element t's H rows into the padded slab interior (bf16)
        pad_ref[t * HP + 1:t * HP + 1 + H, :L] = val.astype(cdt)

    def conv3x3(w_ref, b_ref, L_src):
        # 3x3 same-padding conv as three banded matmuls over the flat slab.
        # Vertical tap a reads rows [a, a+M); horizontal taps + side padding
        # live inside the precomputed band weights.  Single accumulation
        # expression -> MRB in-place accumulate on v7x.
        a0 = pad_ref[0:M, :L_src]
        a1 = pad_ref[1:M + 1, :L_src]
        a2 = pad_ref[2:M + 2, :L_src]
        acc = (jnp.dot(a0, w_ref[0], preferred_element_type=f32)
               + jnp.dot(a1, w_ref[1], preferred_element_type=f32)
               + jnp.dot(a2, w_ref[2], preferred_element_type=f32))
        return acc + b_ref[...]                       # (M, L_dst) f32

    # ---- encode: conv_enc 'f' + ReLU -------------------------------------
    for t in range(tb):
        fill(t, x_ref[t], L_in)
    h = jnp.maximum(conv3x3(w_ef_ref, b_ef_ref, L_in), 0.0)          # (M, L_enc)

    # ---- core 'f': tanh(h @ Wc + (e @ U + b)) -----------------------------
    hc = jnp.dot(h.astype(cdt), wc_f_ref[...], preferred_element_type=f32)
    for t in range(tb):
        blk = jnp.tanh(hc[t * HP:t * HP + H] + ecf_ref[t])           # (H, L_enc)
        z_out_ref[t] = blk.astype(z_out_ref.dtype)                   # forward state only
        fill(t, blk, L_enc)

    # ---- conv_dec 'f' (linear) -> y_  -------------------------------------
    yf = conv3x3(w_df_ref, b_df_ref, L_enc)                          # (M, L_out)

    # ---- NaN gate: y = y_ if any NaN in y else y --------------------------
    use_yf = nan_ref[0] != 0
    for t in range(tb):
        yblk = yf[t * HP:t * HP + H]
        y_out_ref[t] = yblk.astype(y_out_ref.dtype)
        fill(t, jnp.where(use_yf, yblk, y_ref[t]), L_out)

    # ---- decode: conv_dec 'b' + ReLU --------------------------------------
    g = jnp.maximum(conv3x3(w_db_ref, b_db_ref, L_out), 0.0)         # (M, L_enc)

    # ---- core 'b' ----------------------------------------------------------
    gc = jnp.dot(g.astype(cdt), wc_b_ref[...], preferred_element_type=f32)
    for t in range(tb):
        fill(t, jnp.tanh(gc[t * HP:t * HP + H] + ecb_ref[t]), L_enc)

    # ---- conv_enc 'b' (linear) -> x_ ---------------------------------------
    xb = conv3x3(w_eb_ref, b_eb_ref, L_enc)                          # (M, L_in)
    for t in range(tb):
        x_out_ref[t] = xb[t * HP:t * HP + H].astype(x_out_ref.dtype)


def _pick_tb(B, H):
    """Largest batch tile that keeps the grid >= 2 (both v7x TCs busy) and
    TB*(H+2) in the MXU-friendly range."""
    if B <= 1:
        return max(B, 1)
    cap = max(1, 256 // (H + 2))
    best = 1
    for t in range(1, min(B // 2, cap) + 1):
        if B % t == 0:
            best = t
    return best


def _run_fused(nan_flag, x_rows, y_rows, ecf, ecb, kp):
    B, H, L_in = x_rows.shape
    L_out = y_rows.shape[2]
    L_enc = kp["wc_f"].shape[0]
    L_max = max(L_in, L_enc, L_out)
    tb = _pick_tb(B, H)

    return pl.pallas_call(
        _fused_kernel,
        out_shape=(jax.ShapeDtypeStruct((B, H, L_in), jnp.float32),
                   jax.ShapeDtypeStruct((B, H, L_out), jnp.float32),
                   jax.ShapeDtypeStruct((B, H, L_enc), jnp.float32)),
        grid_spec=pltpu.PrefetchScalarGridSpec(
            num_scalar_prefetch=1,                       # NaN flag -> SMEM
            grid=(B // tb,),
            in_specs=[
                pl.BlockSpec((tb, H, L_in), lambda b, nf: (b, 0, 0)),    # x slab
                pl.BlockSpec((tb, H, L_out), lambda b, nf: (b, 0, 0)),   # y slab
                pl.BlockSpec((tb, 1, L_enc), lambda b, nf: (b, 0, 0)),   # e@U+b fwd
                pl.BlockSpec((tb, 1, L_enc), lambda b, nf: (b, 0, 0)),   # e@U+b bwd
                pl.BlockSpec((3, L_in, L_enc), lambda b, nf: (0, 0, 0)), # conv_enc f
                pl.BlockSpec((1, L_enc), lambda b, nf: (0, 0)),
                pl.BlockSpec((L_enc, L_enc), lambda b, nf: (0, 0)),      # core f
                pl.BlockSpec((3, L_enc, L_out), lambda b, nf: (0, 0, 0)),# conv_dec f
                pl.BlockSpec((1, L_out), lambda b, nf: (0, 0)),
                pl.BlockSpec((3, L_out, L_enc), lambda b, nf: (0, 0, 0)),# conv_dec b
                pl.BlockSpec((1, L_enc), lambda b, nf: (0, 0)),
                pl.BlockSpec((L_enc, L_enc), lambda b, nf: (0, 0)),      # core b
                pl.BlockSpec((3, L_enc, L_in), lambda b, nf: (0, 0, 0)), # conv_enc b
                pl.BlockSpec((1, L_in), lambda b, nf: (0, 0)),
            ],
            out_specs=[
                pl.BlockSpec((tb, H, L_in), lambda b, nf: (b, 0, 0)),    # x_
                pl.BlockSpec((tb, H, L_out), lambda b, nf: (b, 0, 0)),   # y_
                pl.BlockSpec((tb, H, L_enc), lambda b, nf: (b, 0, 0)),   # z_
            ],
            scratch_shapes=[
                pltpu.VMEM((tb * (H + 2), L_max), jnp.bfloat16),  # shared padded slab
            ],
        ),
        compiler_params=pltpu.CompilerParams(
            dimension_semantics=("parallel",),
            vmem_limit_bytes=32 * 1024 * 1024,
        ),
    )(nan_flag, x_rows, y_rows, ecf, ecb,
      kp["w_ef"], kp["b_ef"], kp["wc_f"], kp["w_df"], kp["b_df"],
      kp["w_db"], kp["b_db"], kp["wc_b"], kp["w_eb"], kp["b_eb"])


# ----------------------------------------------------------------------------
# One-time parameter layout preparation (hoisted out of the jitted hot path)
# ----------------------------------------------------------------------------
def _lane_pad(c, width):
    mult = 128 // math.gcd(width, 128)
    return ((c + mult - 1) // mult) * mult


def _conv3x3_to_banded(w, width, cin_pad, cout_pad):
    """(C_out, C_in, 3, 3) conv weight -> (3, width*Cin_pad, width*Cout_pad)
    bf16 bands; vertical tap a is bands[a], horizontal taps + side padding are
    encoded in the band structure; channels are zero-padded to lane multiples."""
    c_out, c_in = w.shape[0], w.shape[1]
    wp = jnp.zeros((cout_pad, cin_pad, 3, 3), jnp.float32)
    wp = wp.at[:c_out, :c_in].set(w.astype(jnp.float32))
    mats = []
    for a in range(3):
        m = jnp.zeros((width * cin_pad, width * cout_pad), jnp.float32)
        for b in range(3):
            band = jnp.eye(width, k=1 - b, dtype=jnp.float32)   # wo = wi + 1 - b
            m = m + jnp.kron(band, jnp.transpose(wp[:, :, a, b]))
        mats.append(m)
    return jnp.stack(mats, axis=0).astype(jnp.bfloat16)


def _core_to_banded(Wc, width, cpad):
    c = Wc.shape[0]
    Wp = jnp.zeros((cpad, cpad), jnp.float32).at[:c, :c].set(Wc.astype(jnp.float32))
    return jnp.kron(jnp.eye(width, dtype=jnp.float32), Wp).astype(jnp.bfloat16)


def _bias_row(b, width, cpad):
    bp = jnp.zeros((cpad,), jnp.float32).at[:b.shape[0]].set(b.astype(jnp.float32))
    return jnp.tile(bp, (width,))[None, :]


def prepare_params(p, width):
    c_enc, c_in = p["W_ef"].shape[0], p["W_ef"].shape[1]
    c_out = p["W_df"].shape[0]
    cip = _lane_pad(c_in, width)
    cep = _lane_pad(c_enc, width)
    cop = _lane_pad(c_out, width)
    return {
        "w_ef": _conv3x3_to_banded(p["W_ef"], width, cip, cep),
        "b_ef": _bias_row(p["b_ef"], width, cep),
        "w_eb": _conv3x3_to_banded(p["W_eb"], width, cep, cip),
        "b_eb": _bias_row(p["b_eb"], width, cip),
        "w_df": _conv3x3_to_banded(p["W_df"], width, cep, cop),
        "b_df": _bias_row(p["b_df"], width, cop),
        "w_db": _conv3x3_to_banded(p["W_db"], width, cop, cep),
        "b_db": _bias_row(p["b_db"], width, cep),
        "wc_f": _core_to_banded(p["W_cf"], width, cep),
        "wc_b": _core_to_banded(p["W_cb"], width, cep),
        "U_cf": p["U_cf"].astype(jnp.float32), "b_cf": p["b_cf"].astype(jnp.float32),
        "U_cb": p["U_cb"].astype(jnp.float32), "b_cb": p["b_cb"].astype(jnp.float32),
    }


# ----------------------------------------------------------------------------
# PepperNetCConvInv forward
# ----------------------------------------------------------------------------
def peppernet_cconv_inv(x, y, e, kp):
    """forward(x, y, e) -> (x_, y_, z_); x/y are NCHW, e is (B, e_dim)."""
    B, c_in, H, W = x.shape
    c_out = y.shape[1]
    c_enc = kp["U_cf"].shape[1]
    L_in, L_enc, L_out = kp["w_ef"].shape[1], kp["wc_f"].shape[0], kp["w_df"].shape[2]
    cip, cep, cop = L_in // W, L_enc // W, L_out // W

    # Scalar NaN gate computed once in XLA, scalar-prefetched into the kernel.
    nan_flag = jnp.any(jnp.isnan(y)).astype(jnp.int32).reshape((1,))

    def pad_ch(t, cpad):
        c = t.shape[1]
        return t if cpad == c else jnp.pad(t, ((0, 0), (0, cpad - c), (0, 0), (0, 0)))

    def to_rows(t):      # NCHW -> (B, H, W*C) row slabs (lane index = w*C + c)
        return jnp.transpose(t, (0, 2, 3, 1)).reshape(t.shape[0], t.shape[2], -1)

    def from_rows(t, cpad, c):   # (B, H, W*Cpad) -> NCHW, padded channels sliced off
        b_, h_, l_ = t.shape
        nchw = jnp.transpose(t.reshape(b_, h_, l_ // cpad, cpad), (0, 3, 1, 2))
        return nchw[:, :c]

    def cond_row(U, bvec, cpad):
        # tiny (B, e_dim) @ (e_dim, c_enc) stays in plain XLA; enters the
        # kernel as a (1, W*c_enc) broadcast row per element.
        r = jnp.dot(e, U) + bvec
        r = jnp.pad(r, ((0, 0), (0, cpad - r.shape[1])))
        return jnp.tile(r, (1, W))[:, None, :]

    x_rows = to_rows(pad_ch(x, cip))
    y_rows = to_rows(pad_ch(y, cop))
    ecf = cond_row(kp["U_cf"], kp["b_cf"], cep)
    ecb = cond_row(kp["U_cb"], kp["b_cb"], cep)

    x_rows_, y_rows_, z_rows_ = _run_fused(nan_flag, x_rows, y_rows, ecf, ecb, kp)

    x_ = from_rows(x_rows_, cip, c_in)
    y_ = from_rows(y_rows_, cop, c_out)
    # TODO(synk): m.PepperInvCore's auxiliary output z_ is undefined upstream;
    # realised here as the forward core state.
    z_ = from_rows(z_rows_, cep, c_enc)
    return x_, y_, z_


# ----------------------------------------------------------------------------
# Deterministic parameters + pure-XLA reference for correctness checking
# ----------------------------------------------------------------------------
def make_params(key, c_in, c_out, c_enc, e_dim):
    ks = jax.random.split(key, 16)
    s = 0.1
    n = jax.random.normal
    return {
        # CConvEnc: 'f' conv c_in->c_enc (ReLU), 'b' conv c_enc->c_in
        "W_ef": s * n(ks[0], (c_enc, c_in, 3, 3), jnp.float32),
        "b_ef": s * n(ks[1], (c_enc,), jnp.float32),
        "W_eb": s * n(ks[2], (c_in, c_enc, 3, 3), jnp.float32),
        "b_eb": s * n(ks[3], (c_in,), jnp.float32),
        # PepperInvCore: per-pixel tanh(h @ W + e @ U + b)
        "W_cf": s * n(ks[4], (c_enc, c_enc), jnp.float32),
        "U_cf": s * n(ks[5], (e_dim, c_enc), jnp.float32),
        "b_cf": s * n(ks[6], (c_enc,), jnp.float32),
        "W_cb": s * n(ks[7], (c_enc, c_enc), jnp.float32),
        "U_cb": s * n(ks[8], (e_dim, c_enc), jnp.float32),
        "b_cb": s * n(ks[9], (c_enc,), jnp.float32),
        # CConvDec: 'f' conv c_enc->c_out, 'b' conv c_out->c_enc (ReLU)
        "W_df": s * n(ks[10], (c_out, c_enc, 3, 3), jnp.float32),
        "b_df": s * n(ks[11], (c_out,), jnp.float32),
        "W_db": s * n(ks[12], (c_enc, c_out, 3, 3), jnp.float32),
        "b_db": s * n(ks[13], (c_enc,), jnp.float32),
    }


def reference_forward(x, y, e, p):
    prec = jax.lax.Precision.HIGHEST

    def conv(h, w, b):
        o = jax.lax.conv_general_dilated(
            h, w, window_strides=(1, 1), padding="SAME",
            dimension_numbers=("NCHW", "OIHW", "NCHW"), precision=prec)
        return o + b[None, :, None, None]

    def core(h, Wc, Uc, bc):
        hm = jnp.transpose(h, (0, 2, 3, 1))
        add = (jnp.dot(e, Uc, precision=prec) + bc)[:, None, None, :]
        o = jnp.tanh(jnp.dot(hm, Wc, precision=prec) + add)
        return jnp.transpose(o, (0, 3, 1, 2))

    h = jax.nn.relu(conv(x, p["W_ef"], p["b_ef"]))
    h = core(h, p["W_cf"], p["U_cf"], p["b_cf"])
    y_ = conv(h, p["W_df"], p["b_df"])
    z_ = h
    y2 = jnp.where(jnp.any(jnp.isnan(y)), y_, y)
    g = jax.nn.relu(conv(y2, p["W_db"], p["b_db"]))
    g = core(g, p["W_cb"], p["U_cb"], p["b_cb"])
    x_ = conv(g, p["W_eb"], p["b_eb"])
    return x_, y_, z_


if __name__ == "__main__":
    B, C_IN, C_OUT, C_ENC, H, W, E_DIM = 2, 4, 4, 8, 16, 16, 8

    key = jax.random.PRNGKey(0)
    kx, ky, ke, kprm = jax.random.split(key, 4)
    x = jax.random.normal(kx, (B, C_IN, H, W), jnp.float32)
    y = jax.random.normal(ky, (B, C_OUT, H, W), jnp.float32)
    e = jax.random.normal(ke, (B, E_DIM), jnp.float32)
    params = make_params(kprm, C_IN, C_OUT, C_ENC, E_DIM)
    kparams = prepare_params(params, W)        # one-time layout prep (not hot path)

    fwd = jax.jit(peppernet_cconv_inv)
    x_, y_, z_ = fwd(x, y, e, kparams)
    jax.block_until_ready((x_, y_, z_))

    assert x_.shape == (B, C_IN, H, W)
    assert y_.shape == (B, C_OUT, H, W)
    assert z_.shape == (B, C_ENC, H, W)

    rx, ry, rz = reference_forward(x, y, e, params)
    np.testing.assert_allclose(np.asarray(y_), np.asarray(ry), rtol=2e-2, atol=2e-2)
    np.testing.assert_allclose(np.asarray(z_), np.asarray(rz), rtol=2e-2, atol=2e-2)
    np.testing.assert_allclose(np.asarray(x_), np.asarray(rx), rtol=2e-2, atol=2e-2)

    # NaN-gate branch: a NaN anywhere in y must swap in the computed y_.
    y_nan = y.at[0, 0, 0, 0].set(jnp.nan)
    xn_, yn_, zn_ = fwd(x, y_nan, e, kparams)
    jax.block_until_ready((xn_, yn_, zn_))
    rxn, ryn, rzn = reference_forward(x, y_nan, e, params)
    np.testing.assert_allclose(np.asarray(yn_), np.asarray(ryn), rtol=2e-2, atol=2e-2)
    np.testing.assert_allclose(np.asarray(xn_), np.asarray(rxn), rtol=2e-2, atol=2e-2)

    print("KERNEL_OK")
</pallas_src>

<mosaic_0001>
module attributes {stable_mosaic.version = 11 : i64} {
  func.func @_fused_kernel(%arg0: i32, %arg1: memref<1xi32, #tpu.memory_space<smem>>, %arg2: memref<1x16x128xf32, #tpu.memory_space<vmem>>, %arg3: memref<1x16x128xf32, #tpu.memory_space<vmem>>, %arg4: memref<1x1x128xf32, #tpu.memory_space<vmem>>, %arg5: memref<1x1x128xf32, #tpu.memory_space<vmem>>, %arg6: memref<3x128x128xbf16, #tpu.memory_space<vmem>>, %arg7: memref<1x128xf32, #tpu.memory_space<vmem>>, %arg8: memref<128x128xbf16, #tpu.memory_space<vmem>>, %arg9: memref<3x128x128xbf16, #tpu.memory_space<vmem>>, %arg10: memref<1x128xf32, #tpu.memory_space<vmem>>, %arg11: memref<3x128x128xbf16, #tpu.memory_space<vmem>>, %arg12: memref<1x128xf32, #tpu.memory_space<vmem>>, %arg13: memref<128x128xbf16, #tpu.memory_space<vmem>>, %arg14: memref<3x128x128xbf16, #tpu.memory_space<vmem>>, %arg15: memref<1x128xf32, #tpu.memory_space<vmem>>, %arg16: memref<1x16x128xf32, #tpu.memory_space<vmem>>, %arg17: memref<1x16x128xf32, #tpu.memory_space<vmem>>, %arg18: memref<1x16x128xf32, #tpu.memory_space<vmem>>, %arg19: memref<18x128xbf16, #tpu.memory_space<vmem>>) attributes {dimension_semantics = [#tpu.dimension_semantics<parallel>], iteration_bounds = array<i64: 2>, scalar_prefetch = 1 : i64, scratch_operands = 1 : i64, tpu.core_type = #tpu.core_type<tc>, window_params = [{transform_indices = @transform_0, window_bounds = array<i64: 1, 16, 128>}, {transform_indices = @transform_1, window_bounds = array<i64: 1, 16, 128>}, {transform_indices = @transform_2, window_bounds = array<i64: 1, 1, 128>}, {transform_indices = @transform_3, window_bounds = array<i64: 1, 1, 128>}, {pipeline_mode = #tpu.pipeline_mode<synchronous>, transform_indices = @transform_4, window_bounds = array<i64: 3, 128, 128>}, {pipeline_mode = #tpu.pipeline_mode<synchronous>, transform_indices = @transform_5, window_bounds = array<i64: 1, 128>}, {pipeline_mode = #tpu.pipeline_mode<synchronous>, transform_indices = @transform_6, window_bounds = array<i64: 128, 128>}, {pipeline_mode = #tpu.pipeline_mode<synchronous>, transform_indices = @transform_7, window_bounds = array<i64: 3, 128, 128>}, {pipeline_mode = #tpu.pipeline_mode<synchronous>, transform_indices = @transform_8, window_bounds = array<i64: 1, 128>}, {pipeline_mode = #tpu.pipeline_mode<synchronous>, transform_indices = @transform_9, window_bounds = array<i64: 3, 128, 128>}, {pipeline_mode = #tpu.pipeline_mode<synchronous>, transform_indices = @transform_10, window_bounds = array<i64: 1, 128>}, {pipeline_mode = #tpu.pipeline_mode<synchronous>, transform_indices = @transform_11, window_bounds = array<i64: 128, 128>}, {pipeline_mode = #tpu.pipeline_mode<synchronous>, transform_indices = @transform_12, window_bounds = array<i64: 3, 128, 128>}, {pipeline_mode = #tpu.pipeline_mode<synchronous>, transform_indices = @transform_13, window_bounds = array<i64: 1, 128>}, {transform_indices = @transform_14, window_bounds = array<i64: 1, 16, 128>}, {transform_indices = @transform_15, window_bounds = array<i64: 1, 16, 128>}, {transform_indices = @transform_16, window_bounds = array<i64: 1, 16, 128>}]} {
    %cst = arith.constant 0.000000e+00 : bf16
    %0 = vector.broadcast %cst : bf16 to vector<1x128xbf16>
    %c0 = arith.constant 0 : index
    %c0_0 = arith.constant 0 : index
    %1 = vector.load %arg19[%c0, %c0_0] : memref<18x128xbf16, #tpu.memory_space<vmem>>, vector<1x128xbf16>
    tpu.vector_store %arg19[%c0, %c0_0], %0 {strides = array<i32>} : memref<18x128xbf16, #tpu.memory_space<vmem>>, vector<1x128xbf16>,
    %c17 = arith.constant 17 : index
    %c0_1 = arith.constant 0 : index
    %2 = vector.load %arg19[%c17, %c0_1] : memref<18x128xbf16, #tpu.memory_space<vmem>>, vector<1x128xbf16>
    tpu.vector_store %arg19[%c17, %c0_1], %0 {strides = array<i32>} : memref<18x128xbf16, #tpu.memory_space<vmem>>, vector<1x128xbf16>,
    %c0_2 = arith.constant 0 : index
    %c0_3 = arith.constant 0 : index
    %c0_4 = arith.constant 0 : index
    %3 = vector.load %arg2[%c0_2, %c0_3, %c0_4] : memref<1x16x128xf32, #tpu.memory_space<vmem>>, vector<1x16x128xf32>
    %4 = vector.shape_cast %3 : vector<1x16x128xf32> to vector<16x128xf32>
    %5 = arith.truncf %4 : vector<16x128xf32> to vector<16x128xbf16>
    %c1 = arith.constant 1 : index
    %c0_5 = arith.constant 0 : index
    %6 = vector.load %arg19[%c1, %c0_5] : memref<18x128xbf16, #tpu.memory_space<vmem>>, vector<16x128xbf16>
    tpu.vector_store %arg19[%c1, %c0_5], %5 {strides = array<i32>} : memref<18x128xbf16, #tpu.memory_space<vmem>>, vector<16x128xbf16>,
    %c0_6 = arith.constant 0 : index
    %c0_7 = arith.constant 0 : index
    %7 = vector.load %arg19[%c0_6, %c0_7] : memref<18x128xbf16, #tpu.memory_space<vmem>>, vector<16x128xbf16>
    %c1_8 = arith.constant 1 : index
    %c0_9 = arith.constant 0 : index
    %8 = vector.load %arg19[%c1_8, %c0_9] : memref<18x128xbf16, #tpu.memory_space<vmem>>, vector<16x128xbf16>
    %c2 = arith.constant 2 : index
    %c0_10 = arith.constant 0 : index
    %9 = vector.load %arg19[%c2, %c0_10] : memref<18x128xbf16, #tpu.memory_space<vmem>>, vector<16x128xbf16>
    %c0_11 = arith.constant 0 : index
    %c0_12 = arith.constant 0 : index
    %c0_13 = arith.constant 0 : index
    %10 = vector.load %arg6[%c0_11, %c0_12, %c0_13] : memref<3x128x128xbf16, #tpu.memory_space<vmem>>, vector<1x128x128xbf16>
    %11 = vector.shape_cast %10 : vector<1x128x128xbf16> to vector<128x128xbf16>
    %cst_14 = arith.constant dense<0.000000e+00> : vector<16x128xf32>
    %12 = tpu.matmul %7, %11, %cst_14 {dimension_numbers = #tpu.dot_dimension_numbers<[1], [0], [0], [1], [0, 0, 1, 1], [], []>} : vector<16x128xbf16>, vector<128x128xbf16>, vector<16x128xf32> -> vector<16x128xf32>
    %c1_15 = arith.constant 1 : index
    %c0_16 = arith.constant 0 : index
    %c0_17 = arith.constant 0 : index
    %13 = vector.load %arg6[%c1_15, %c0_16, %c0_17] : memref<3x128x128xbf16, #tpu.memory_space<vmem>>, vector<1x128x128xbf16>
    %14 = vector.shape_cast %13 : vector<1x128x128xbf16> to vector<128x128xbf16>
    %cst_18 = arith.constant dense<0.000000e+00> : vector<16x128xf32>
    %15 = tpu.matmul %8, %14, %cst_18 {dimension_numbers = #tpu.dot_dimension_numbers<[1], [0], [0], [1], [0, 0, 1, 1], [], []>} : vector<16x128xbf16>, vector<128x128xbf16>, vector<16x128xf32> -> vector<16x128xf32>
    %16 = arith.addf %12, %15 : vector<16x128xf32>
    %c2_19 = arith.constant 2 : index
    %c0_20 = arith.constant 0 : index
    %c0_21 = arith.constant 0 : index
    %17 = vector.load %arg6[%c2_19, %c0_20, %c0_21] : memref<3x128x128xbf16, #tpu.memory_space<vmem>>, vector<1x128x128xbf16>
    %18 = vector.shape_cast %17 : vector<1x128x128xbf16> to vector<128x128xbf16>
    %cst_22 = arith.constant dense<0.000000e+00> : vector<16x128xf32>
    %19 = tpu.matmul %9, %18, %cst_22 {dimension_numbers = #tpu.dot_dimension_numbers<[1], [0], [0], [1], [0, 0, 1, 1], [], []>} : vector<16x128xbf16>, vector<128x128xbf16>, vector<16x128xf32> -> vector<16x128xf32>
    %20 = arith.addf %16, %19 : vector<16x128xf32>
    %c0_23 = arith.constant 0 : index
    %c0_24 = arith.constant 0 : index
    %21 = vector.load %arg7[%c0_23, %c0_24] : memref<1x128xf32, #tpu.memory_space<vmem>>, vector<1x128xf32>
    %22 = vector.broadcast %21 : vector<1x128xf32> to vector<16x128xf32>
    %23 = arith.addf %20, %22 : vector<16x128xf32>
    %cst_25 = arith.constant 0.000000e+00 : f32
    %24 = vector.broadcast %cst_25 : f32 to vector<16x128xf32>
    %25 = arith.maximumf %23, %24 : vector<16x128xf32>
    %26 = arith.truncf %25 : vector<16x128xf32> to vector<16x128xbf16>
    %c0_26 = arith.constant 0 : index
    %c0_27 = arith.constant 0 : index
    %27 = vector.load %arg8[%c0_26, %c0_27] : memref<128x128xbf16, #tpu.memory_space<vmem>>, vector<128x128xbf16>
    %cst_28 = arith.constant dense<0.000000e+00> : vector<16x128xf32>
    %28 = tpu.matmul %26, %27, %cst_28 {dimension_numbers = #tpu.dot_dimension_numbers<[1], [0], [0], [1], [0, 0, 1, 1], [], []>} : vector<16x128xbf16>, vector<128x128xbf16>, vector<16x128xf32> -> vector<16x128xf32>
    %c0_29 = arith.constant 0 : index
    %c0_30 = arith.constant 0 : index
    %c0_31 = arith.constant 0 : index
    %29 = vector.load %arg4[%c0_29, %c0_30, %c0_31] : memref<1x1x128xf32, #tpu.memory_space<vmem>>, vector<1x1x128xf32>
    %30 = vector.shape_cast %29 : vector<1x1x128xf32> to vector<1x128xf32>
    %31 = vector.broadcast %30 : vector<1x128xf32> to vector<16x128xf32>
    %32 = arith.addf %28, %31 : vector<16x128xf32>
    %33 = math.tanh %32 : vector<16x128xf32>
    %c0_32 = arith.constant 0 : index
    %c0_33 = arith.constant 0 : index
    %c0_34 = arith.constant 0 : index
    %34 = vector.load %arg18[%c0_32, %c0_33, %c0_34] : memref<1x16x128xf32, #tpu.memory_space<vmem>>, vector<1x16x128xf32>
    %35 = vector.shape_cast %34 : vector<1x16x128xf32> to vector<16x128xf32>
    %36 = vector.shape_cast %33 : vector<16x128xf32> to vector<1x16x128xf32>
    tpu.vector_store %arg18[%c0_32, %c0_33, %c0_34], %36 {strides = array<i32>} : memref<1x16x128xf32, #tpu.memory_space<vmem>>, vector<1x16x128xf32>,
    %37 = arith.truncf %33 : vector<16x128xf32> to vector<16x128xbf16>
    %c1_35 = arith.constant 1 : index
    %c0_36 = arith.constant 0 : index
    %38 = vector.load %arg19[%c1_35, %c0_36] : memref<18x128xbf16, #tpu.memory_space<vmem>>, vector<16x128xbf16>
    tpu.vector_store %arg19[%c1_35, %c0_36], %37 {strides = array<i32>} : memref<18x128xbf16, #tpu.memory_space<vmem>>, vector<16x128xbf16>,
    %c0_37 = arith.constant 0 : index
    %c0_38 = arith.constant 0 : index
    %39 = vector.load %arg19[%c0_37, %c0_38] : memref<18x128xbf16, #tpu.memory_space<vmem>>, vector<16x128xbf16>
    %c1_39 = arith.constant 1 : index
    %c0_40 = arith.constant 0 : index
    %40 = vector.load %arg19[%c1_39, %c0_40] : memref<18x128xbf16, #tpu.memory_space<vmem>>, vector<16x128xbf16>
    %c2_41 = arith.constant 2 : index
    %c0_42 = arith.constant 0 : index
    %41 = vector.load %arg19[%c2_41, %c0_42] : memref<18x128xbf16, #tpu.memory_space<vmem>>, vector<16x128xbf16>
    %c0_43 = arith.constant 0 : index
    %c0_44 = arith.constant 0 : index
    %c0_45 = arith.constant 0 : index
    %42 = vector.load %arg9[%c0_43, %c0_44, %c0_45] : memref<3x128x128xbf16, #tpu.memory_space<vmem>>, vector<1x128x128xbf16>
    %43 = vector.shape_cast %42 : vector<1x128x128xbf16> to vector<128x128xbf16>
    %cst_46 = arith.constant dense<0.000000e+00> : vector<16x128xf32>
    %44 = tpu.matmul %39, %43, %cst_46 {dimension_numbers = #tpu.dot_dimension_numbers<[1], [0], [0], [1], [0, 0, 1, 1], [], []>} : vector<16x128xbf16>, vector<128x128xbf16>, vector<16x128xf32> -> vector<16x128xf32>
    %c1_47 = arith.constant 1 : index
    %c0_48 = arith.constant 0 : index
    %c0_49 = arith.constant 0 : index
    %45 = vector.load %arg9[%c1_47, %c0_48, %c0_49] : memref<3x128x128xbf16, #tpu.memory_space<vmem>>, vector<1x128x128xbf16>
    %46 = vector.shape_cast %45 : vector<1x128x128xbf16> to vector<128x128xbf16>
    %cst_50 = arith.constant dense<0.000000e+00> : vector<16x128xf32>
    %47 = tpu.matmul %40, %46, %cst_50 {dimension_numbers = #tpu.dot_dimension_numbers<[1], [0], [0], [1], [0, 0, 1, 1], [], []>} : vector<16x128xbf16>, vector<128x128xbf16>, vector<16x128xf32> -> vector<16x128xf32>
    %48 = arith.addf %44, %47 : vector<16x128xf32>
    %c2_51 = arith.constant 2 : index
    %c0_52 = arith.constant 0 : index
    %c0_53 = arith.constant 0 : index
    %49 = vector.load %arg9[%c2_51, %c0_52, %c0_53] : memref<3x128x128xbf16, #tpu.memory_space<vmem>>, vector<1x128x128xbf16>
    %50 = vector.shape_cast %49 : vector<1x128x128xbf16> to vector<128x128xbf16>
    %cst_54 = arith.constant dense<0.000000e+00> : vector<16x128xf32>
    %51 = tpu.matmul %41, %50, %cst_54 {dimension_numbers = #tpu.dot_dimension_numbers<[1], [0], [0], [1], [0, 0, 1, 1], [], []>} : vector<16x128xbf16>, vector<128x128xbf16>, vector<16x128xf32> -> vector<16x128xf32>
    %52 = arith.addf %48, %51 : vector<16x128xf32>
    %c0_55 = arith.constant 0 : index
    %c0_56 = arith.constant 0 : index
    %53 = vector.load %arg10[%c0_55, %c0_56] : memref<1x128xf32, #tpu.memory_space<vmem>>, vector<1x128xf32>
    %54 = vector.broadcast %53 : vector<1x128xf32> to vector<16x128xf32>
    %55 = arith.addf %52, %54 : vector<16x128xf32>
    %c0_57 = arith.constant 0 : index
    %56 = memref.load %arg1[%c0_57] : memref<1xi32, #tpu.memory_space<smem>>
    %c0_i32 = arith.constant 0 : i32
    %57 = arith.cmpi ne, %56, %c0_i32 : i32
    %c0_58 = arith.constant 0 : index
    %c0_59 = arith.constant 0 : index
    %c0_60 = arith.constant 0 : index
    %58 = vector.load %arg17[%c0_58, %c0_59, %c0_60] : memref<1x16x128xf32, #tpu.memory_space<vmem>>, vector<1x16x128xf32>
    %59 = vector.shape_cast %58 : vector<1x16x128xf32> to vector<16x128xf32>
    %60 = vector.shape_cast %55 : vector<16x128xf32> to vector<1x16x128xf32>
    tpu.vector_store %arg17[%c0_58, %c0_59, %c0_60], %60 {strides = array<i32>} : memref<1x16x128xf32, #tpu.memory_space<vmem>>, vector<1x16x128xf32>,
    %c0_61 = arith.constant 0 : index
    %c0_62 = arith.constant 0 : index
    %c0_63 = arith.constant 0 : index
    %61 = vector.load %arg3[%c0_61, %c0_62, %c0_63] : memref<1x16x128xf32, #tpu.memory_space<vmem>>, vector<1x16x128xf32>
    %62 = vector.shape_cast %61 : vector<1x16x128xf32> to vector<16x128xf32>
    %63 = arith.select %57, %55, %62 : vector<16x128xf32>
    %64 = arith.truncf %63 : vector<16x128xf32> to vector<16x128xbf16>
    %c1_64 = arith.constant 1 : index
    %c0_65 = arith.constant 0 : index
    %65 = vector.load %arg19[%c1_64, %c0_65] : memref<18x128xbf16, #tpu.memory_space<vmem>>, vector<16x128xbf16>
    tpu.vector_store %arg19[%c1_64, %c0_65], %64 {strides = array<i32>} : memref<18x128xbf16, #tpu.memory_space<vmem>>, vector<16x128xbf16>,
    %c0_66 = arith.constant 0 : index
    %c0_67 = arith.constant 0 : index
    %66 = vector.load %arg19[%c0_66, %c0_67] : memref<18x128xbf16, #tpu.memory_space<vmem>>, vector<16x128xbf16>
    %c1_68 = arith.constant 1 : index
    %c0_69 = arith.constant 0 : index
    %67 = vector.load %arg19[%c1_68, %c0_69] : memref<18x128xbf16, #tpu.memory_space<vmem>>, vector<16x128xbf16>
    %c2_70 = arith.constant 2 : index
    %c0_71 = arith.constant 0 : index
    %68 = vector.load %arg19[%c2_70, %c0_71] : memref<18x128xbf16, #tpu.memory_space<vmem>>, vector<16x128xbf16>
    %c0_72 = arith.constant 0 : index
    %c0_73 = arith.constant 0 : index
    %c0_74 = arith.constant 0 : index
    %69 = vector.load %arg11[%c0_72, %c0_73, %c0_74] : memref<3x128x128xbf16, #tpu.memory_space<vmem>>, vector<1x128x128xbf16>
    %70 = vector.shape_cast %69 : vector<1x128x128xbf16> to vector<128x128xbf16>
    %cst_75 = arith.constant dense<0.000000e+00> : vector<16x128xf32>
    %71 = tpu.matmul %66, %70, %cst_75 {dimension_numbers = #tpu.dot_dimension_numbers<[1], [0], [0], [1], [0, 0, 1, 1], [], []>} : vector<16x128xbf16>, vector<128x128xbf16>, vector<16x128xf32> -> vector<16x128xf32>
    %c1_76 = arith.constant 1 : index
    %c0_77 = arith.constant 0 : index
    %c0_78 = arith.constant 0 : index
    %72 = vector.load %arg11[%c1_76, %c0_77, %c0_78] : memref<3x128x128xbf16, #tpu.memory_space<vmem>>, vector<1x128x128xbf16>
    %73 = vector.shape_cast %72 : vector<1x128x128xbf16> to vector<128x128xbf16>
    %cst_79 = arith.constant dense<0.000000e+00> : vector<16x128xf32>
    %74 = tpu.matmul %67, %73, %cst_79 {dimension_numbers = #tpu.dot_dimension_numbers<[1], [0], [0], [1], [0, 0, 1, 1], [], []>} : vector<16x128xbf16>, vector<128x128xbf16>, vector<16x128xf32> -> vector<16x128xf32>
    %75 = arith.addf %71, %74 : vector<16x128xf32>
    %c2_80 = arith.constant 2 : index
    %c0_81 = arith.constant 0 : index
    %c0_82 = arith.constant 0 : index
    %76 = vector.load %arg11[%c2_80, %c0_81, %c0_82] : memref<3x128x128xbf16, #tpu.memory_space<vmem>>, vector<1x128x128xbf16>
    %77 = vector.shape_cast %76 : vector<1x128x128xbf16> to vector<128x128xbf16>
    %cst_83 = arith.constant dense<0.000000e+00> : vector<16x128xf32>
    %78 = tpu.matmul %68, %77, %cst_83 {dimension_numbers = #tpu.dot_dimension_numbers<[1], [0], [0], [1], [0, 0, 1, 1], [], []>} : vector<16x128xbf16>, vector<128x128xbf16>, vector<16x128xf32> -> vector<16x128xf32>
    %79 = arith.addf %75, %78 : vector<16x128xf32>
    %c0_84 = arith.constant 0 : index
    %c0_85 = arith.constant 0 : index
    %80 = vector.load %arg12[%c0_84, %c0_85] : memref<1x128xf32, #tpu.memory_space<vmem>>, vector<1x128xf32>
    %81 = vector.broadcast %80 : vector<1x128xf32> to vector<16x128xf32>
    %82 = arith.addf %79, %81 : vector<16x128xf32>
    %cst_86 = arith.constant 0.000000e+00 : f32
    %83 = vector.broadcast %cst_86 : f32 to vector<16x128xf32>
    %84 = arith.maximumf %82, %83 : vector<16x128xf32>
    %85 = arith.truncf %84 : vector<16x128xf32> to vector<16x128xbf16>
    %c0_87 = arith.constant 0 : index
    %c0_88 = arith.constant 0 : index
    %86 = vector.load %arg13[%c0_87, %c0_88] : memref<128x128xbf16, #tpu.memory_space<vmem>>, vector<128x128xbf16>
    %cst_89 = arith.constant dense<0.000000e+00> : vector<16x128xf32>
    %87 = tpu.matmul %85, %86, %cst_89 {dimension_numbers = #tpu.dot_dimension_numbers<[1], [0], [0], [1], [0, 0, 1, 1], [], []>} : vector<16x128xbf16>, vector<128x128xbf16>, vector<16x128xf32> -> vector<16x128xf32>
    %c0_90 = arith.constant 0 : index
    %c0_91 = arith.constant 0 : index
    %c0_92 = arith.constant 0 : index
    %88 = vector.load %arg5[%c0_90, %c0_91, %c0_92] : memref<1x1x128xf32, #tpu.memory_space<vmem>>, vector<1x1x128xf32>
    %89 = vector.shape_cast %88 : vector<1x1x128xf32> to vector<1x128xf32>
    %90 = vector.broadcast %89 : vector<1x128xf32> to vector<16x128xf32>
    %91 = arith.addf %87, %90 : vector<16x128xf32>
    %92 = math.tanh %91 : vector<16x128xf32>
    %93 = arith.truncf %92 : vector<16x128xf32> to vector<16x128xbf16>
    %c1_93 = arith.constant 1 : index
    %c0_94 = arith.constant 0 : index
    %94 = vector.load %arg19[%c1_93, %c0_94] : memref<18x128xbf16, #tpu.memory_space<vmem>>, vector<16x128xbf16>
    tpu.vector_store %arg19[%c1_93, %c0_94], %93 {strides = array<i32>} : memref<18x128xbf16, #tpu.memory_space<vmem>>, vector<16x128xbf16>,
    %c0_95 = arith.constant 0 : index
    %c0_96 = arith.constant 0 : index
    %95 = vector.load %arg19[%c0_95, %c0_96] : memref<18x128xbf16, #tpu.memory_space<vmem>>, vector<16x128xbf16>
    %c1_97 = arith.constant 1 : index
    %c0_98 = arith.constant 0 : index
    %96 = vector.load %arg19[%c1_97, %c0_98] : memref<18x128xbf16, #tpu.memory_space<vmem>>, vector<16x128xbf16>
    %c2_99 = arith.constant 2 : index
    %c0_100 = arith.constant 0 : index
    %97 = vector.load %arg19[%c2_99, %c0_100] : memref<18x128xbf16, #tpu.memory_space<vmem>>, vector<16x128xbf16>
    %c0_101 = arith.constant 0 : index
    %c0_102 = arith.constant 0 : index
    %c0_103 = arith.constant 0 : index
    %98 = vector.load %arg14[%c0_101, %c0_102, %c0_103] : memref<3x128x128xbf16, #tpu.memory_space<vmem>>, vector<1x128x128xbf16>
    %99 = vector.shape_cast %98 : vector<1x128x128xbf16> to vector<128x128xbf16>
    %cst_104 = arith.constant dense<0.000000e+00> : vector<16x128xf32>
    %100 = tpu.matmul %95, %99, %cst_104 {dimension_numbers = #tpu.dot_dimension_numbers<[1], [0], [0], [1], [0, 0, 1, 1], [], []>} : vector<16x128xbf16>, vector<128x128xbf16>, vector<16x128xf32> -> vector<16x128xf32>
    %c1_105 = arith.constant 1 : index
    %c0_106 = arith.constant 0 : index
    %c0_107 = arith.constant 0 : index
    %101 = vector.load %arg14[%c1_105, %c0_106, %c0_107] : memref<3x128x128xbf16, #tpu.memory_space<vmem>>, vector<1x128x128xbf16>
    %102 = vector.shape_cast %101 : vector<1x128x128xbf16> to vector<128x128xbf16>
    %cst_108 = arith.constant dense<0.000000e+00> : vector<16x128xf32>
    %103 = tpu.matmul %96, %102, %cst_108 {dimension_numbers = #tpu.dot_dimension_numbers<[1], [0], [0], [1], [0, 0, 1, 1], [], []>} : vector<16x128xbf16>, vector<128x128xbf16>, vector<16x128xf32> -> vector<16x128xf32>
    %104 = arith.addf %100, %103 : vector<16x128xf32>
    %c2_109 = arith.constant 2 : index
    %c0_110 = arith.constant 0 : index
    %c0_111 = arith.constant 0 : index
    %105 = vector.load %arg14[%c2_109, %c0_110, %c0_111] : memref<3x128x128xbf16, #tpu.memory_space<vmem>>, vector<1x128x128xbf16>
    %106 = vector.shape_cast %105 : vector<1x128x128xbf16> to vector<128x128xbf16>
    %cst_112 = arith.constant dense<0.000000e+00> : vector<16x128xf32>
    %107 = tpu.matmul %97, %106, %cst_112 {dimension_numbers = #tpu.dot_dimension_numbers<[1], [0], [0], [1], [0, 0, 1, 1], [], []>} : vector<16x128xbf16>, vector<128x128xbf16>, vector<16x128xf32> -> vector<16x128xf32>
    %108 = arith.addf %104, %107 : vector<16x128xf32>
    %c0_113 = arith.constant 0 : index
    %c0_114 = arith.constant 0 : index
    %109 = vector.load %arg15[%c0_113, %c0_114] : memref<1x128xf32, #tpu.memory_space<vmem>>, vector<1x128xf32>
    %110 = vector.broadcast %109 : vector<1x128xf32> to vector<16x128xf32>
    %111 = arith.addf %108, %110 : vector<16x128xf32>
    %c0_115 = arith.constant 0 : index
    %c0_116 = arith.constant 0 : index
    %c0_117 = arith.constant 0 : index
    %112 = vector.load %arg16[%c0_115, %c0_116, %c0_117] : memref<1x16x128xf32, #tpu.memory_space<vmem>>, vector<1x16x128xf32>
    %113 = vector.shape_cast %112 : vector<1x16x128xf32> to vector<16x128xf32>
    %114 = vector.shape_cast %111 : vector<16x128xf32> to vector<1x16x128xf32>
    tpu.vector_store %arg16[%c0_115, %c0_116, %c0_117], %114 {strides = array<i32>} : memref<1x16x128xf32, #tpu.memory_space<vmem>>, vector<1x16x128xf32>,
    return
  }
  func.func @transform_0(%arg0: i32, %arg1: memref<1xi32, #tpu.memory_space<smem>>) -> (i32, i32, i32) {
    %c0_i32 = arith.constant 0 : i32
    %c0_i32_0 = arith.constant 0 : i32
    %c0_i32_1 = arith.constant 0 : i32
    return %arg0, %c0_i32, %c0_i32_0 : i32, i32, i32
  }
  func.func @transform_1(%arg0: i32, %arg1: memref<1xi32, #tpu.memory_space<smem>>) -> (i32, i32, i32) {
    %c0_i32 = arith.constant 0 : i32
    %c0_i32_0 = arith.constant 0 : i32
    %c0_i32_1 = arith.constant 0 : i32
    return %arg0, %c0_i32, %c0_i32_0 : i32, i32, i32
  }
  func.func @transform_2(%arg0: i32, %arg1: memref<1xi32, #tpu.memory_space<smem>>) -> (i32, i32, i32) {
    %c0_i32 = arith.constant 0 : i32
    %c0_i32_0 = arith.constant 0 : i32
    %c0_i32_1 = arith.constant 0 : i32
    return %arg0, %c0_i32, %c0_i32_0 : i32, i32, i32
  }
  func.func @transform_3(%arg0: i32, %arg1: memref<1xi32, #tpu.memory_space<smem>>) -> (i32, i32, i32) {
    %c0_i32 = arith.constant 0 : i32
    %c0_i32_0 = arith.constant 0 : i32
    %c0_i32_1 = arith.constant 0 : i32
    return %arg0, %c0_i32, %c0_i32_0 : i32, i32, i32
  }
  func.func @transform_4(%arg0: i32, %arg1: memref<1xi32, #tpu.memory_space<smem>>) -> (i32, i32, i32) {
    %c0_i32 = arith.constant 0 : i32
    %c0_i32_0 = arith.constant 0 : i32
    %c0_i32_1 = arith.constant 0 : i32
    %c0_i32_2 = arith.constant 0 : i32
    return %c0_i32, %c0_i32_0, %c0_i32_1 : i32, i32, i32
  }
  func.func @transform_5(%arg0: i32, %arg1: memref<1xi32, #tpu.memory_space<smem>>) -> (i32, i32) {
    %c0_i32 = arith.constant 0 : i32
    %c0_i32_0 = arith.constant 0 : i32
    %c0_i32_1 = arith.constant 0 : i32
    return %c0_i32, %c0_i32_0 : i32, i32
  }
  func.func @transform_6(%arg0: i32, %arg1: memref<1xi32, #tpu.memory_space<smem>>) -> (i32, i32) {
    %c0_i32 = arith.constant 0 : i32
    %c0_i32_0 = arith.constant 0 : i32
    %c0_i32_1 = arith.constant 0 : i32
    return %c0_i32, %c0_i32_0 : i32, i32
  }
  func.func @transform_7(%arg0: i32, %arg1: memref<1xi32, #tpu.memory_space<smem>>) -> (i32, i32, i32) {
    %c0_i32 = arith.constant 0 : i32
    %c0_i32_0 = arith.constant 0 : i32
    %c0_i32_1 = arith.constant 0 : i32
    %c0_i32_2 = arith.constant 0 : i32
    return %c0_i32, %c0_i32_0, %c0_i32_1 : i32, i32, i32
  }
  func.func @transform_8(%arg0: i32, %arg1: memref<1xi32, #tpu.memory_space<smem>>) -> (i32, i32) {
    %c0_i32 = arith.constant 0 : i32
    %c0_i32_0 = arith.constant 0 : i32
    %c0_i32_1 = arith.constant 0 : i32
    return %c0_i32, %c0_i32_0 : i32, i32
  }
  func.func @transform_9(%arg0: i32, %arg1: memref<1xi32, #tpu.memory_space<smem>>) -> (i32, i32, i32) {
    %c0_i32 = arith.constant 0 : i32
    %c0_i32_0 = arith.constant 0 : i32
    %c0_i32_1 = arith.constant 0 : i32
    %c0_i32_2 = arith.constant 0 : i32
    return %c0_i32, %c0_i32_0, %c0_i32_1 : i32, i32, i32
  }
  func.func @transform_10(%arg0: i32, %arg1: memref<1xi32, #tpu.memory_space<smem>>) -> (i32, i32) {
    %c0_i32 = arith.constant 0 : i32
    %c0_i32_0 = arith.constant 0 : i32
    %c0_i32_1 = arith.constant 0 : i32
    return %c0_i32, %c0_i32_0 : i32, i32
  }
  func.func @transform_11(%arg0: i32, %arg1: memref<1xi32, #tpu.memory_space<smem>>) -> (i32, i32) {
    %c0_i32 = arith.constant 0 : i32
    %c0_i32_0 = arith.constant 0 : i32
    %c0_i32_1 = arith.constant 0 : i32
    return %c0_i32, %c0_i32_0 : i32, i32
  }
  func.func @transform_12(%arg0: i32, %arg1: memref<1xi32, #tpu.memory_space<smem>>) -> (i32, i32, i32) {
    %c0_i32 = arith.constant 0 : i32
    %c0_i32_0 = arith.constant 0 : i32
    %c0_i32_1 = arith.constant 0 : i32
    %c0_i32_2 = arith.constant 0 : i32
    return %c0_i32, %c0_i32_0, %c0_i32_1 : i32, i32, i32
  }
  func.func @transform_13(%arg0: i32, %arg1: memref<1xi32, #tpu.memory_space<smem>>) -> (i32, i32) {
    %c0_i32 = arith.constant 0 : i32
    %c0_i32_0 = arith.constant 0 : i32
    %c0_i32_1 = arith.constant 0 : i32
    return %c0_i32, %c0_i32_0 : i32, i32
  }
  func.func @transform_14(%arg0: i32, %arg1: memref<1xi32, #tpu.memory_space<smem>>) -> (i32, i32, i32) {
    %c0_i32 = arith.constant 0 : i32
    %c0_i32_0 = arith.constant 0 : i32
    %c0_i32_1 = arith.constant 0 : i32
    return %arg0, %c0_i32, %c0_i32_0 : i32, i32, i32
  }
  func.func @transform_15(%arg0: i32, %arg1: memref<1xi32, #tpu.memory_space<smem>>) -> (i32, i32, i32) {
    %c0_i32 = arith.constant 0 : i32
    %c0_i32_0 = arith.constant 0 : i32
    %c0_i32_1 = arith.constant 0 : i32
    return %arg0, %c0_i32, %c0_i32_0 : i32, i32, i32
  }
  func.func @transform_16(%arg0: i32, %arg1: memref<1xi32, #tpu.memory_space<smem>>) -> (i32, i32, i32) {
    %c0_i32 = arith.constant 0 : i32
    %c0_i32_0 = arith.constant 0 : i32
    %c0_i32_1 = arith.constant 0 : i32
    return %arg0, %c0_i32, %c0_i32_0 : i32, i32, i32
  }
}

</mosaic_0001>

<bundles_post_ra>
// kernel: peppernet_cconv_inv.1
= control target key start
LH: loop header
LB: loop body
LE: loop exit
PB: predicated region body
PF: predicated region fallthrough
CT: control target
= control target key end

     0   :  { %s3034_s27 = smov 0   ;;  %s3500_s0 = inlined_call_operand.<no memory space> [shape: s32[1], index: 0, kind: input, shape index: {}]   ;;  %s3501_s1 = inlined_call_operand.vmem [shape: f32[2,16,128], index: 1, kind: input, shape index: {}]   ;;  %s3502_s2 = inlined_call_operand.vmem [shape: f32[2,16,128], index: 2, kind: input, shape index: {}]   ;;  %s3503_s3 = inlined_call_operand.vmem [shape: f32[2,1,128], index: 3, kind: input, shape index: {}]   ;;  %s3504_s4 = inlined_call_operand.vmem [shape: f32[2,1,128], index: 4, kind: input, shape index: {}]   ;;  %s3505_s5 = inlined_call_operand.vmem [shape: bf16[3,128,128], index: 5, kind: input, shape index: {}]   ;;  %s3506_s6 = inlined_call_operand.vmem [shape: f32[1,128], index: 6, kind: input, shape index: {}]   ;;  %s3507_s7 = inlined_call_operand.vmem [shape: bf16[128,128], index: 7, kind: input, shape index: {}]   ;;  %s3508_s8 = inlined_call_operand.vmem [shape: bf16[3,128,128], index: 8, kind: input, shape index: {}]   ;;  %s3509_s9 = inlined_call_operand.vmem [shape: f32[1,128], index: 9, kind: input, shape index: {}]   ;;  %s3510_s10 = inlined_call_operand.vmem [shape: bf16[3,128,128], index: 10, kind: input, shape index: {}]   ;;  %s3511_s11 = inlined_call_operand.vmem [shape: f32[1,128], index: 11, kind: input, shape index: {}]   ;;  %s3512_s12 = inlined_call_operand.vmem [shape: bf16[128,128], index: 12, kind: input, shape index: {}]   ;;  %s3513_s13 = inlined_call_operand.vmem [shape: bf16[3,128,128], index: 13, kind: input, shape index: {}]   ;;  %s3514_s14 = inlined_call_operand.vmem [shape: f32[1,128], index: 14, kind: input, shape index: {}]   ;;  %s3515_s15 = inlined_call_operand.vmem [shape: f32[2,16,128], index: 15, kind: output, shape index: {0}]   ;;  %s3516_s16 = inlined_call_operand.vmem [shape: f32[2,16,128], index: 16, kind: output, shape index: {1}]   ;;  %s3517_s17 = inlined_call_operand.vmem [shape: f32[2,16,128], index: 17, kind: output, shape index: {2}]  }
   0x1   :  { %3518 = sst [smem:[#allocation5_spill]] %s3500_s0 }
   0x2   :  { %3519 = sst [smem:[#allocation6_spill]] %s3501_s1 }
   0x3   :  { %s3520_s26 = sld [smem:[#allocation5_spill]] }
   0x9   :  { %23 = sst [smem:[#allocation4]] %s3520_s26 }
   0xa LB: > { %s2180_s28 = sadd.s32 4294967295, %s2939_s27   ;;  %p2184_p0 = scmp.ge.s32.totalorder %s2939_s27, 1  ;;  %s2939_s27 = sphi %s3034_s27, %s29_s27  }
   0xb   : > { %p495_p1 = scmp.lt.s32.totalorder %s2939_s27, 3 }
   0xd   : > { %p496_p2 = pnand %p2184_p0, %p495_p1 }
   0xe   : > { %p566_p3 = scmp.lt.s32.totalorder (!%p496_p2), %s2180_s28, 1  ;;  %s3521_s20 = sld [smem:[#allocation6_spill]] (!%p496_p2) }
   0xf   : > { %499 = sbr.rel (%p496_p2) target bundleno = 1022 (0x3fe), region = 76  ;;  %s1318_s30 = sld [smem:[#allocation4]] (!%p496_p2) }
  0x14   : > { %v2793_v0 = vld [vmem:[%s3505_s5 + $0x78] sm:$0xff]  ;;  %v2792_v3 = vld [vmem:[%s3505_s5 + $0x70] sm:$0xff]  ;;  %s3531_s28 = smov (!%p566_p3, %s2180_s28), 1  ;;  %vm599_vm0 = vsmask.f32 256  ;;  %v2791_v6 = vld [vmem:[%s3505_s5 + $0x68] sm:$0xff] }
  0x15   : > { %v2785_v1 = vld [vmem:[%s3505_s5 + $0x38] sm:$0xff]  ;;  %751 = vmatpush.bf16.msra.mxu0 %v2793_v0  ;;  %v2784_v4 = vld [vmem:[%s3505_s5 + $0x30] sm:$0xff]  ;;  %s3063_s26 = sshll.u32 %s3531_s28, 4  ;;  %v2783_v7 = vld [vmem:[%s3505_s5 + $0x28] sm:$0xff]  ;;  %vm598_vm1 = vcmask 1040384   ;;  %vm635_vm6 = vcmask 1043456   ;;  %s578_s24 = scalar_lea.vmem %s3503_s3, %s3531_s28 }
  0x16   : > { %v2801_v2 = vld [vmem:[%s3505_s5 + $0xb8] sm:$0xff]  ;;  %814 = vmatpush.bf16.msra.mxu1 %v2785_v1  ;;  %v2800_v5 = vld [vmem:[%s3505_s5 + $0xb0] sm:$0xff]  ;;  %s570_s21 = scalar_lea.vmem %s3521_s20, %s3063_s26  ;;  %vm604_vm2 = vsmask.f32 7938  ;;  %v2799_v8 = vld [vmem:[%s3505_s5 + $0xa8] sm:$0xff]  ;;  %vm848_vm9 = vcmask 1046528   ;;  %s596_s22 = scalar_lea.vmem %s3517_s17, %s3063_s26 }
  0x17   : > { %901 = vmatpush.bf16.msra.mxu2 %v2801_v2  ;;  %v2790_v9 = vld [vmem:[%s3505_s5 + $0x60] sm:$0xff]  ;;  %vm3085_vm3 = vmand %vm598_vm1, %vm599_vm0  ;;  %v606_v13 = vld [vmem:[#allocation2 + $0x8] sm:$0x1]  ;;  %vm613_vm5 = vsmask.f32 4368  ;;  %p1319_p4 = scmp.ne.s32.totalorder %s1318_s30, 0  ;;  %s575_s23 = scalar_lea.vmem %s3502_s2, %s3063_s26 }
  0x18   : > { %v2782_v10 = vld [vmem:[%s3505_s5 + $0x20] sm:$0xff]  ;;  %vm605_vm4 = vmand %vm598_vm1, %vm604_vm2  ;;  %v610_v16 = vld [vmem:[%s570_s21 + $0x8] sm:$0xff]  ;;  %vm689_vm10 = vsmask.f32 7424  ;;  %s591_s1 = scalar_lea.vmem %s3516_s16, %s3063_s26 }
  0x19   : > { %752 = vmatpush.bf16.msra.mxu0 %v2792_v3  ;;  %v601_v12 = vld [vmem:[#allocation2] sm:$0x1]  ;;  %v607_v18 = vsel %vm605_vm4, 0, %v606_v13  ;;  %v612_v20 = vpack.c.bf16 %v610_v16, %v610_v16  ;;  %v2809_v21 = vld [vmem:[%s3507_s7 + $0x38] sm:$0xff]  ;;  %v2808_v22 = vld [vmem:[%s3507_s7 + $0x30] sm:$0xff] }
  0x1a   : > { %815 = vmatpush.bf16.msra.mxu1 %v2784_v4  ;;  %v602_v14 = vsel %vm3085_vm3, 0, %v601_v12  ;;  %v609_v15 = vld [vmem:[%s570_s21] sm:$0xff]  ;;  %608 = vst [vmem:[#allocation2 + $0x8] sm:$0x1] %v607_v18  ;;  %994 = vmatpush.bf16.msra.mxu3 %v2809_v21  ;;  %v2789_v27 = vld [vmem:[%s3505_s5 + $0x58] sm:$0xff]  ;;  %vm3109_vm7 = vmor %vm599_vm0, %vm613_vm5 }
  0x1b   : > { %902 = vmatpush.bf16.msra.mxu2 %v2800_v5  ;;  %v2798_v17 = vld [vmem:[%s3505_s5 + $0xa0] sm:$0xff]  ;;  %603 = vst [vmem:[#allocation2] sm:$0x1] %v602_v14  ;;  %v611_v19 = vpack.c.bf16 %v609_v15, %v609_v15  ;;  %v624_v25 = vshrl.u32 %v612_v20, 16  ;;  %v627_v26 = vshll.u32 %v612_v20, 16  ;;  %v2781_v28 = vld [vmem:[%s3505_s5 + $0x18] sm:$0xff]  ;;  %vm3118_vm8 = vmand %vm635_vm6, %vm604_vm2 }
  0x1c   : > { %v2797_v32 = vld [vmem:[%s3505_s5 + $0x98] sm:$0xff]  ;;  %v2788_v39 = vld [vmem:[%s3505_s5 + $0x50] sm:$0xff]  ;;  %v2787_v46 = vld [vmem:[%s3505_s5 + $0x48] sm:$0xff]  ;;  %s1324_s30 = scalar_select %p1319_p4, 1, 0 }
  0x1d   : > { %753 = vmatpush.bf16.msra.mxu0 %v2791_v6  ;;  %v616_v23 = vshrl.u32 %v611_v19, 16  ;;  %v619_v24 = vshll.u32 %v611_v19, 16  ;;  %v626_v31 = vrot.slane %v624_v25, 7  ;;  %v2780_v40 = vld [vmem:[%s3505_s5 + $0x10] sm:$0xff]  ;;  %v2779_v47 = vld [vmem:[%s3505_s5 + $0x8] sm:$0xff]  ;;  %v2786_v49 = vld [vmem:[%s3505_s5 + $0x40] sm:$0xff] }
  0x1e   : > { %816 = vmatpush.bf16.msra.mxu1 %v2783_v7  ;;  %995 = vmatpush.bf16.msra.mxu3 %v2808_v22  ;;  %v2796_v44 = vld [vmem:[%s3505_s5 + $0x90] sm:$0xff]  ;;  %v2795_v48 = vld [vmem:[%s3505_s5 + $0x88] sm:$0xff]  ;;  %v2778_v50 = vld [vmem:[%s3505_s5] sm:$0xff] }
  0x1f   : > { %903 = vmatpush.bf16.msra.mxu2 %v2799_v8  ;;  %v618_v30 = vrot.slane %v616_v23, 7  ;;  %v629_v36 = vor.u32 %v627_v26, %v626_v31  ;;  %v631_v37 = vrot.slane %v626_v31, 4  ;;  %v2794_v52 = vld [vmem:[%s3505_s5 + $0x80] sm:$0xff]  ;;  %v2807_v5 = vld [vmem:[%s3507_s7 + $0x28] sm:$0xff]  ;;  %v2805_v7 = vld [vmem:[%s3507_s7 + $0x18] sm:$0xff] }
  0x20   : > { %v2806_v6 = vld [vmem:[%s3507_s7 + $0x20] sm:$0xff]  ;;  %v2804_v8 = vld [vmem:[%s3507_s7 + $0x10] sm:$0xff]  ;;  %v2833_v31 = vld [vmem:[%s3508_s8 + $0xb8] sm:$0xff] }
  0x21   : > { %754 = vmatpush.bf16.msra.mxu0 %v2790_v9  ;;  %v621_v34 = vor.u32 %v619_v24, %v618_v30  ;;  %v622_v35 = vrot.slane %v618_v30, 4  ;;  %v641_v43 = vld [vmem:[#allocation2 + $0x8] sm:$0x1]  ;;  %v2919_v19 = vld [vmem:[%s3506_s6] ss:$0 sm:$0xff]  ;;  %v2816_v30 = vld [vmem:[%s3508_s8 + $0x30] sm:$0xff] }
  0x22   : > { %817 = vmatpush.bf16.msra.mxu1 %v2782_v10  ;;  %v637_v38 = vld [vmem:[#allocation2] sm:$0xf]  ;;  %v642_v45 = vsel %vm3085_vm3, %v631_v37, %v641_v43  ;;  %996 = vmatpush.bf16.msra.mxu3 %v2807_v5  ;;  %v2803_v9 = vld [vmem:[%s3507_s7 + $0x8] sm:$0xff]  ;;  %v2824_v37 = vld [vmem:[%s3508_s8 + $0x70] sm:$0xff] }
  0x23   : > { %904 = vmatpush.bf16.msra.mxu2 %v2798_v17  ;;  %v630_v41 = vsel %vm3109_vm7, %v622_v35, %v629_v36  ;;  %v638_v42 = vsel %vm3118_vm8, %v621_v34, %v637_v38  ;;  %643 = vst [vmem:[#allocation2 + $0x8] sm:$0x1] %v642_v45  ;;  %v2802_v10 = vld [vmem:[%s3507_s7] sm:$0xff]  ;;  %v2825_v34 = vld [vmem:[%s3508_s8 + $0x78] sm:$0xff]  ;;  %v2832_v35 = vld [vmem:[%s3508_s8 + $0xb0] sm:$0xff] }
  0x24   : > { %639 = vst [vmem:[#allocation2] sm:$0xf] %v638_v42  ;;  %v2814_v36 = vld [vmem:[%s3508_s8 + $0x20] sm:$0xff]  ;;  %v2831_v38 = vld [vmem:[%s3508_s8 + $0xa8] sm:$0xff]  ;;  %v2812_v42 = vld [vmem:[%s3508_s8 + $0x10] sm:$0xff] }
  0x25   : > { %755 = vmatpush.bf16.msra.mxu0 %v2789_v27  ;;  %640 = vst [vmem:[#allocation2 + $0x4] sm:$0xf] %v630_v41  ;;  %v2830_v41 = vld [vmem:[%s3508_s8 + $0xa0] sm:$0xff]  ;;  %v2811_v45 = vld [vmem:[%s3508_s8 + $0x8] sm:$0xff] }
  0x26   : > { %818 = vmatpush.bf16.msra.mxu1 %v2781_v28  ;;  %997 = vmatpush.bf16.msra.mxu3 %v2806_v6  ;;  %v2817_v28 = vld [vmem:[%s3508_s8 + $0x38] sm:$0xff]  ;;  %v2822_v43 = vld [vmem:[%s3508_s8 + $0x60] sm:$0xff] }
  0x27   : > { %905 = vmatpush.bf16.msra.mxu2 %v2797_v32  ;;  %v2815_v32 = vld [vmem:[%s3508_s8 + $0x28] sm:$0xff] }
  0x29   : > { %756 = vmatpush.bf16.msra.mxu0 %v2788_v39  ;;  %v2813_v39 = vld [vmem:[%s3508_s8 + $0x18] sm:$0xff] }
  0x2a   : > { %819 = vmatpush.bf16.msra.mxu1 %v2780_v40  ;;  %v646_v55 = vld [vmem:[#allocation2 + $0x8] sm:$0x1]  ;;  %998 = vmatpush.bf16.msra.mxu3 %v2805_v7 }
  0x2b   : > { %906 = vmatpush.bf16.msra.mxu2 %v2796_v44  ;;  %v2903_v51 = vld [vmem:[#allocation2] sm:$0xe]  ;;  %v686_v58 = vunpack.c.l.b16 %v646_v55  ;;  %v2823_v40 = vld [vmem:[%s3508_s8 + $0x68] sm:$0xff]  ;;  %v2829_v44 = vld [vmem:[%s3508_s8 + $0x98] sm:$0xff] }
  0x2c   : > { %v2891_v53 = vld [vmem:[#allocation2] sm:$0xff]  }
  0x2d   : > { %757 = vmatpush.bf16.msra.mxu0 %v2787_v46  ;;  %v2902_v54 = vld [vmem:[#allocation2] sm:$0xf0]  ;;  %v693_v56 = vshll.u32 %v2891_v53, 16  ;;  %v691_v59 = vshrl.u32 %v2891_v53, 16  ;;  %v688_v61 = vpack.c.b16 %v686_v58, %v686_v58  ;;  %v2821_v46 = vld [vmem:[%s3508_s8 + $0x58] sm:$0xff] }
  0x2e   : > { %820 = vmatpush.bf16.msra.mxu1 %v2779_v47  ;;  %v2904_v57 = vor.u32 %v2903_v51, %v2902_v54  ;;  %999 = vmatpush.bf16.msra.mxu3 %v2804_v8  ;;  %v2920_v47 = vld [vmem:[%s578_s24] ss:$0 sm:$0xff]  ;;  %v2819_v54 = vld [vmem:[%s3508_s8 + $0x48] sm:$0xff]  ;;  %s581_s24 = scalar_lea.vmem %s3504_s4, %s3531_s28 }
  0x2f   : > { %907 = vmatpush.bf16.msra.mxu2 %v2795_v48  ;;  %v695_v60 = vrot.slane %v693_v56, 1  ;;  %v698_v0 = vshll.u32 %v688_v61, 16  ;;  %v850_v1 = vrot.slane %v688_v61, 1  ;;  %v2828_v48 = vld [vmem:[%s3508_s8 + $0x90] sm:$0xff]  ;;  %v2826_v55 = vld [vmem:[%s3508_s8 + $0x80] sm:$0xff] }
  0x30   : > { %v849_v62 = vrot.slane %v2904_v57, 1  ;;  %v2818_v56 = vld [vmem:[%s3508_s8 + $0x40] sm:$0xff]  ;;  %v1038_v8 = vld [vmem:[#allocation2 + $0x8] sm:$0x1] }
  0x31   : > { %758 = vmatpush.bf16.msra.mxu0 %v2786_v49  ;;  %v696_v63 = vor.u32 %v695_v60, %v691_v59  ;;  %v700_v2 = vrot.slane %v698_v0, 1  ;;  %v2810_v49 = vld [vmem:[%s3508_s8] sm:$0xff] }
  0x32   : > { %821 = vmatpush.bf16.msra.mxu1 %v2778_v50  ;;  %v851_v3 = vsel %vm848_vm9, %v849_v62, %v850_v1  ;;  %1000 = vmatpush.bf16.msra.mxu3 %v2803_v9  ;;  %v2820_v50 = vld [vmem:[%s3508_s8 + $0x50] sm:$0xff]  ;;  %v1034_v0 = vld [vmem:[#allocation2] sm:$0xf] }
  0x33   : > { %908 = vmatpush.bf16.msra.mxu2 %v2794_v52  ;;  %v701_v4 = vsel %vm689_vm10, %v696_v63, %v700_v2 }
  0x34   : > { %759 = vmatmul.bf16.vlgmr.msra.gmra.mxu0 %v701_v4 }
  0x35   : > { %822 = vmatmul.bf16.vlgmr.msra.gmra.mxu1 %v2891_v53  ;;  %1147 = vmatpush.bf16.msrb.mxu0 %v2825_v34  ;;  %v2827_v53 = vld [vmem:[%s3508_s8 + $0x88] sm:$0xff]  ;;  %v2841_v34 = vld [vmem:[%s3510_s10 + $0x38] sm:$0xff] }
  0x36   : > { %909 = vmatmul.bf16.vlgmr.msra.gmra.mxu2 %v851_v3  ;;  %1001 = vmatpush.bf16.msra.mxu3 %v2802_v10 }
  0x37   : > { %1210 = vmatpush.bf16.msrb.mxu1 %v2817_v28  ;;  %1296 = vmatpush.bf16.msrb.mxu2 %v2833_v31 }
  0x39   : > { %1148 = vmatpush.bf16.msrb.mxu0 %v2824_v37  ;;  %v2849_v37 = vld [vmem:[%s3510_s10 + $0x78] sm:$0xff] }
  0x3a   : > { %1464 = vmatpush.bf16.msrb.mxu3 %v2849_v37 }
  0x3b   : > { %1211 = vmatpush.bf16.msrb.mxu1 %v2816_v30  ;;  %1297 = vmatpush.bf16.msrb.mxu2 %v2832_v35  ;;  %v2857_v35 = vld [vmem:[%s3510_s10 + $0xb8] sm:$0xff] }
  0x3d   : > { %1149 = vmatpush.bf16.msrb.mxu0 %v2823_v40  ;;  %v2848_v40 = vld [vmem:[%s3510_s10 + $0x70] sm:$0xff] }
  0x3e   : > { %1465 = vmatpush.bf16.msrb.mxu3 %v2848_v40 }
  0x3f   : > { %1212 = vmatpush.bf16.msrb.mxu1 %v2815_v32  ;;  %1298 = vmatpush.bf16.msrb.mxu2 %v2831_v38  ;;  %v2856_v38 = vld [vmem:[%s3510_s10 + $0xb0] sm:$0xff] }
  0x41   : > { %1150 = vmatpush.bf16.msrb.mxu0 %v2822_v43  ;;  %v2847_v43 = vld [vmem:[%s3510_s10 + $0x68] sm:$0xff] }
  0x42   : > { %1466 = vmatpush.bf16.msrb.mxu3 %v2847_v43 }
  0x43   : > { %1213 = vmatpush.bf16.msrb.mxu1 %v2814_v36  ;;  %1299 = vmatpush.bf16.msrb.mxu2 %v2830_v41  ;;  %v2840_v36 = vld [vmem:[%s3510_s10 + $0x30] sm:$0xff]  ;;  %v2855_v41 = vld [vmem:[%s3510_s10 + $0xa8] sm:$0xff] }
  0x45   : > { %1151 = vmatpush.bf16.msrb.mxu0 %v2821_v46  ;;  %v2846_v46 = vld [vmem:[%s3510_s10 + $0x60] sm:$0xff] }
  0x46   : > { %1467 = vmatpush.bf16.msrb.mxu3 %v2846_v46 }
  0x47   : > { %1214 = vmatpush.bf16.msrb.mxu1 %v2813_v39  ;;  %1300 = vmatpush.bf16.msrb.mxu2 %v2829_v44  ;;  %v2839_v39 = vld [vmem:[%s3510_s10 + $0x28] sm:$0xff]  ;;  %v2854_v44 = vld [vmem:[%s3510_s10 + $0xa0] sm:$0xff] }
  0x49   : > { %1152 = vmatpush.bf16.msrb.mxu0 %v2820_v50  ;;  %v2852_v50 = vld [vmem:[%s3510_s10 + $0x90] sm:$0xff] }
  0x4b   : > { %1215 = vmatpush.bf16.msrb.mxu1 %v2812_v42  ;;  %1301 = vmatpush.bf16.msrb.mxu2 %v2828_v48  ;;  %v2838_v42 = vld [vmem:[%s3510_s10 + $0x20] sm:$0xff]  ;;  %v2836_v48 = vld [vmem:[%s3510_s10 + $0x10] sm:$0xff] }
  0x4d   : > { %1153 = vmatpush.bf16.msrb.mxu0 %v2819_v54  ;;  %v2844_v54 = vld [vmem:[%s3510_s10 + $0x50] sm:$0xff] }
  0x4f   : > { %1216 = vmatpush.bf16.msrb.mxu1 %v2811_v45  ;;  %1302 = vmatpush.bf16.msrb.mxu2 %v2827_v53  ;;  %v2837_v45 = vld [vmem:[%s3510_s10 + $0x18] sm:$0xff] }
  0x51   : > { %1154 = vmatpush.bf16.msrb.mxu0 %v2818_v56  ;;  %v2834_v56 = vld [vmem:[%s3510_s10] sm:$0xff] }
  0x53   : > { %1217 = vmatpush.bf16.msrb.mxu1 %v2810_v49  ;;  %1303 = vmatpush.bf16.msrb.mxu2 %v2826_v55  ;;  %v2845_v49 = vld [vmem:[%s3510_s10 + $0x58] sm:$0xff]  ;;  %v2851_v55 = vld [vmem:[%s3510_s10 + $0x88] sm:$0xff] }
  0x54   : > { %1468 = vmatpush.bf16.msrb.mxu3 %v2845_v49 }
  0x55   : > { %1527 = vmatpush.bf16.msra.mxu0 %v2841_v34 }
  0x57   : > { %1613 = vmatpush.bf16.msra.mxu1 %v2857_v35 }
  0x58   : > { %1469 = vmatpush.bf16.msrb.mxu3 %v2844_v54  ;;  %v2865_v54 = vld [vmem:[%s3512_s12 + $0x38] sm:$0xff] }
  0x59   : > { %1528 = vmatpush.bf16.msra.mxu0 %v2840_v36  ;;  %1706 = vmatpush.bf16.msra.mxu2 %v2865_v54 }
  0x5b   : > { %1614 = vmatpush.bf16.msra.mxu1 %v2856_v38 }
  0x5d   : > { %1529 = vmatpush.bf16.msra.mxu0 %v2839_v39 }
  0x5f   : > { %1615 = vmatpush.bf16.msra.mxu1 %v2855_v41 }
  0x61   : > { %1530 = vmatpush.bf16.msra.mxu0 %v2838_v42 }
  0x63   : > { %1616 = vmatpush.bf16.msra.mxu1 %v2854_v44 }
  0x65   : > { %1531 = vmatpush.bf16.msra.mxu0 %v2837_v45 }
  0x69   : > { %1532 = vmatpush.bf16.msra.mxu0 %v2836_v48 }
  0xb1   : > { %v760_v13 = vpop.f32.mrf.mxu0 }
  0xb2   : > { %v823_v12 = vpop.f32.mrf.mxu1 }
  0xb3   : > { %v824_v15 = vadd.f32 %v823_v12, %v760_v13 }
  0xb9   : > { %v910_v14 = vpop.f32.mrf.mxu2  ;;  %v762_v16 = vpop.f32.mrf.mxu0 }
  0xba   : > { %v825_v17 = vpop.f32.mrf.mxu1  ;;  %v915_v18 = vadd.f32 %v910_v14, %v824_v15 }
  0xbb   : > { %v826_v20 = vadd.f32 %v825_v17, %v762_v16 }
  0xbc   : > { %v921_v22 = vadd.f32 %v2919_v19, %v915_v18 }
  0xbe   : > { %v923_v25 = vmax.f32 %v921_v22, 0.0 }
  0xc1   : > { %v912_v21 = vpop.f32.mrf.mxu2 }
  0xc2   : > { %v916_v23 = vadd.f32 %v912_v21, %v826_v20 }
  0xc4   : > { %v922_v24 = vadd.f32 %v2919_v19, %v916_v23 }
  0xc6   : > { %v924_v26 = vmax.f32 %v922_v24, 0.0 }
  0xc8   : > { %v925_v27 = vpack.c.bf16 %v924_v26, %v923_v25 }
  0xca   : > { %1002 = vmatmul.bf16.vlgmr.msra.gmra.mxu3 %v925_v27 }
 0x14d   : > { %v1003_v51 = vpop.f32.mrf.mxu3 }
 0x14e   : > { %v1004_v52 = vadd.f32 %v2920_v47, %v1003_v51  ;;  %v2835_v51 = vld [vmem:[%s3510_s10 + $0x8] sm:$0xff] }
 0x14f   : > { %1533 = vmatpush.bf16.msra.mxu0 %v2835_v51 }
 0x150   : > { %2925 = vtanh.f32 %v1004_v52 }
 0x153   : > { %1534 = vmatpush.bf16.msra.mxu0 %v2834_v56  ;;  %v2863_v56 = vld [vmem:[%s3512_s12 + $0x28] sm:$0xff] }
 0x155   : > { %v1005_v57 = vpop.f32.mrf.mxu3 }
 0x156   : > { %v2926_v58 = vpop.eup %2925  ;;  %v1006_v59 = vadd.f32 %v2920_v47, %v1005_v57  ;;  %v2853_v47 = vld [vmem:[%s3510_s10 + $0x98] sm:$0xff] }
 0x157   : > { %1010 = vst [vmem:[%s596_s22] sm:$0xff] %v2926_v58  ;;  %v1012_v60 = vpack.c.bf16 %v2926_v58, %v2926_v58  ;;  %1617 = vmatpush.bf16.msra.mxu1 %v2853_v47  ;;  %v2921_v58 = vld [vmem:[%s3509_s9] ss:$0 sm:$0xff] }
 0x158   : > { %2927 = vtanh.f32 %v1006_v59  ;;  %v1325_v59 = vstv %s1324_s30 }
 0x159   : > { %v1015_v61 = vshrl.u32 %v1012_v60, 16  ;;  %v1018_v63 = vshll.u32 %v1012_v60, 16  ;;  %vm3348_vm11 = vcmp.eq.s32.totalorder %v1325_v59, 1  ;;  %v2860_v59 = vld [vmem:[%s3512_s12 + $0x10] sm:$0xff] }
 0x15b   : > { %v1017_v62 = vrot.slane %v1015_v61, 7  ;;  %1618 = vmatpush.bf16.msra.mxu1 %v2852_v50  ;;  %v2843_v61 = vld [vmem:[%s3510_s10 + $0x48] sm:$0xff] }
 0x15c   : > { %1470 = vmatpush.bf16.msrb.mxu3 %v2843_v61  ;;  %v2858_v61 = vld [vmem:[%s3512_s12] sm:$0xff] }
 0x15d   : > { %v1020_v1 = vor.u32 %v1018_v63, %v1017_v62  ;;  %v1021_v9 = vrot.slane %v1017_v62, 4  ;;  %v1322_v63 = vld [vmem:[%s575_s23] sm:$0xff] }
 0x15e   : > { %v2928_v2 = vpop.eup %2927 }
 0x15f   : > { %v1035_v3 = vsel %vm3118_vm8, %v1020_v1, %v1034_v0  ;;  %1011 = vst [vmem:[%s596_s22 + $0x8] sm:$0xff] %v2928_v2  ;;  %v1013_v4 = vpack.c.bf16 %v2928_v2, %v2928_v2  ;;  %1619 = vmatpush.bf16.msra.mxu1 %v2851_v55  ;;  %v2850_v1 = vld [vmem:[%s3510_s10 + $0x80] sm:$0xff]  ;;  %v2864_v55 = vld [vmem:[%s3512_s12 + $0x30] sm:$0xff] }
 0x160   : > { %1036 = vst [vmem:[#allocation2] sm:$0xf] %v1035_v3  ;;  %1707 = vmatpush.bf16.msra.mxu2 %v2864_v55 }
 0x161   : > { %v1023_v5 = vshrl.u32 %v1013_v4, 16  ;;  %v1026_v7 = vshll.u32 %v1013_v4, 16 }
 0x163   : > { %v1025_v6 = vrot.slane %v1023_v5, 7  ;;  %1620 = vmatpush.bf16.msra.mxu1 %v2850_v1 }
 0x164   : > { %1708 = vmatpush.bf16.msra.mxu2 %v2863_v56 }
 0x165   : > { %v1028_v10 = vor.u32 %v1026_v7, %v1025_v6  ;;  %v1030_v12 = vrot.slane %v1025_v6, 4  ;;  %v2842_v7 = vld [vmem:[%s3510_s10 + $0x40] sm:$0xff] }
 0x166   : > { %1471 = vmatpush.bf16.msrb.mxu3 %v2842_v7 }
 0x167   : > { %v1029_v13 = vsel %vm3109_vm7, %v1021_v9, %v1028_v10  ;;  %v1039_v14 = vsel %vm3085_vm3, %v1030_v12, %v1038_v8  ;;  %v2906_v18 = vld [vmem:[#allocation2] sm:$0xe] }
 0x168   : > { %1037 = vst [vmem:[#allocation2 + $0x4] sm:$0xf] %v1029_v13 }
 0x169   : > { %1040 = vst [vmem:[#allocation2 + $0x8] sm:$0x1] %v1039_v14 }
 0x16f   : > { %v2895_v15 = vld [vmem:[#allocation2] sm:$0xff]  }
 0x170   : > { %v2905_v16 = vld [vmem:[#allocation2] sm:$0xf0]  ;;  %1218 = vmatmul.bf16.vlgmr.msrb.gmra.mxu1 %v2895_v15  ;;  %v1043_v17 = vld [vmem:[#allocation2 + $0x8] sm:$0x1]  ;;  %v1089_v19 = vshll.u32 %v2895_v15, 16  ;;  %v1087_v26 = vshrl.u32 %v2895_v15, 16 }
 0x171   : > { %v1083_v20 = vunpack.c.l.b16 %v1043_v17  ;;  %v2907_v21 = vor.u32 %v2906_v18, %v2905_v16  ;;  %v1323_v15 = vld [vmem:[%s575_s23 + $0x8] sm:$0xff]  ;;  %v1351_v18 = vld [vmem:[#allocation2] sm:$0xf] }
 0x172   : > { %v1091_v23 = vrot.slane %v1089_v19, 1 }
 0x173   : > { %v1085_v22 = vpack.c.b16 %v1083_v20, %v1083_v20  ;;  %v1244_v24 = vrot.slane %v2907_v21, 1 }
 0x174   : > { %v1092_v30 = vor.u32 %v1091_v23, %v1087_v26 }
 0x175   : > { %v1245_v25 = vrot.slane %v1085_v22, 1  ;;  %v1094_v27 = vshll.u32 %v1085_v22, 16 }
 0x177   : > { %v1246_v28 = vsel %vm848_vm9, %v1244_v24, %v1245_v25  ;;  %v1096_v31 = vrot.slane %v1094_v27, 1 }
 0x178   : > { %1304 = vmatmul.bf16.vlgmr.msrb.gmra.mxu2 %v1246_v28  ;;  %v1355_v28 = vld [vmem:[#allocation2 + $0x8] sm:$0x1] }
 0x179   : > { %v1097_v32 = vsel %vm689_vm10, %v1092_v30, %v1096_v31 }
 0x17a   : > { %1155 = vmatmul.bf16.vlgmr.msrb.gmra.mxu0 %v1097_v32 }
 0x1ed   : > { %v1219_v52 = vpop.f32.mrf.mxu1 }
 0x1f5   : > { %v1221_v5 = vpop.f32.mrf.mxu1 }
 0x1f7   : > { %v1156_v53 = vpop.f32.mrf.mxu0 }
 0x1f8   : > { %v1220_v57 = vadd.f32 %v1219_v52, %v1156_v53 }
 0x1fb   : > { %v1305_v60 = vpop.f32.mrf.mxu2 }
 0x1fc   : > { %v1310_v62 = vadd.f32 %v1305_v60, %v1220_v57  ;;  %v2862_v57 = vld [vmem:[%s3512_s12 + $0x20] sm:$0xff]  ;;  %v2859_v60 = vld [vmem:[%s3512_s12 + $0x8] sm:$0xff] }
 0x1fd   : > { %1709 = vmatpush.bf16.msra.mxu2 %v2862_v57 }
 0x1fe   : > { %v1316_v2 = vadd.f32 %v2921_v58, %v1310_v62 }
 0x1ff   : > { %v1158_v3 = vpop.f32.mrf.mxu0 }
 0x200   : > { %1320 = vst [vmem:[%s591_s1] sm:$0xff] %v1316_v2  ;;  %v1327_v4 = vsel %vm3348_vm11, %v1316_v2, %v1322_v63  ;;  %v1222_v8 = vadd.f32 %v1221_v5, %v1158_v3  ;;  %v2922_v3 = vld [vmem:[%s3511_s11] ss:$0 sm:$0xff] }
 0x201   : > { %v1329_v6 = vpack.c.bf16 %v1327_v4, %v1327_v4 }
 0x203   : > { %v1332_v9 = vshrl.u32 %v1329_v6, 16  ;;  %v1307_v10 = vpop.f32.mrf.mxu2  ;;  %v1335_v14 = vshll.u32 %v1329_v6, 16 }
 0x204   : > { %v1311_v12 = vadd.f32 %v1307_v10, %v1222_v8 }
 0x205   : > { %v1334_v13 = vrot.slane %v1332_v9, 7 }
 0x206   : > { %v1317_v16 = vadd.f32 %v2921_v58, %v1311_v12  ;;  %v2861_v58 = vld [vmem:[%s3512_s12 + $0x18] sm:$0xff] }
 0x207   : > { %v1337_v17 = vor.u32 %v1335_v14, %v1334_v13  ;;  %v1338_v25 = vrot.slane %v1334_v13, 4  ;;  %1710 = vmatpush.bf16.msra.mxu2 %v2861_v58 }
 0x208   : > { %1321 = vst [vmem:[%s591_s1 + $0x8] sm:$0xff] %v1317_v16  ;;  %v1328_v19 = vsel %vm3348_vm11, %v1317_v16, %v1323_v15  ;;  %v2873_v15 = vld [vmem:[%s3513_s13 + $0x38] sm:$0xff]  ;;  %v2872_v16 = vld [vmem:[%s3513_s13 + $0x30] sm:$0xff]  ;;  %s586_s1 = scalar_lea.vmem %s3515_s15, %s3063_s26 }
 0x209   : > { %v1352_v20 = vsel %vm3118_vm8, %v1337_v17, %v1351_v18  ;;  %v1330_v21 = vpack.c.bf16 %v1328_v19, %v1328_v19  ;;  %1919 = vmatpush.bf16.msrb.mxu0 %v2873_v15  ;;  %v2889_v17 = vld [vmem:[%s3513_s13 + $0xb8] sm:$0xff]  ;;  %v2871_v18 = vld [vmem:[%s3513_s13 + $0x28] sm:$0xff] }
 0x20a   : > { %1353 = vst [vmem:[#allocation2] sm:$0xf] %v1352_v20  ;;  %2005 = vmatpush.bf16.msrb.mxu1 %v2889_v17  ;;  %v2881_v19 = vld [vmem:[%s3513_s13 + $0x78] sm:$0xff]  ;;  %v2888_v20 = vld [vmem:[%s3513_s13 + $0xb0] sm:$0xff] }
 0x20b   : > { %v1340_v22 = vshrl.u32 %v1330_v21, 16  ;;  %v1343_v24 = vshll.u32 %v1330_v21, 16  ;;  %1711 = vmatpush.bf16.msra.mxu2 %v2860_v59  ;;  %1856 = vmatpush.bf16.msra.mxu3 %v2881_v19  ;;  %v2870_v21 = vld [vmem:[%s3513_s13 + $0x20] sm:$0xff] }
 0x20c   : > { %v2924_v19 = vld [vmem:[%s3514_s14] ss:$0 sm:$0xff] }
 0x20d   : > { %v1342_v23 = vrot.slane %v1340_v22, 7  ;;  %1920 = vmatpush.bf16.msrb.mxu0 %v2872_v16  ;;  %v2880_v22 = vld [vmem:[%s3513_s13 + $0x70] sm:$0xff] }
 0x20e   : > { %2006 = vmatpush.bf16.msrb.mxu1 %v2888_v20 }
 0x20f   : > { %v1345_v26 = vor.u32 %v1343_v24, %v1342_v23  ;;  %v1347_v27 = vrot.slane %v1342_v23, 4  ;;  %1712 = vmatpush.bf16.msra.mxu2 %v2859_v60  ;;  %1857 = vmatpush.bf16.msra.mxu3 %v2880_v22  ;;  %v2887_v23 = vld [vmem:[%s3513_s13 + $0xa8] sm:$0xff]  ;;  %v2869_v24 = vld [vmem:[%s3513_s13 + $0x18] sm:$0xff] }
 0x211   : > { %v1346_v30 = vsel %vm3109_vm7, %v1338_v25, %v1345_v26  ;;  %v1356_v31 = vsel %vm3085_vm3, %v1347_v27, %v1355_v28  ;;  %v3368_v32 = vld [vmem:[#allocation2] sm:$0xf]  ;;  %1921 = vmatpush.bf16.msrb.mxu0 %v2871_v18  ;;  %v2879_v25 = vld [vmem:[%s3513_s13 + $0x68] sm:$0xff]  ;;  %v2868_v27 = vld [vmem:[%s3513_s13 + $0x10] sm:$0xff] }
 0x212   : > { %1354 = vst [vmem:[#allocation2 + $0x4] sm:$0xf] %v1346_v30  ;;  %v1361_v34 = vld [vmem:[#allocation2] sm:$0xe]  ;;  %v1398_v36 = vunpack.c.l.b16 %v3368_v32  ;;  %2007 = vmatpush.bf16.msrb.mxu1 %v2887_v23  ;;  %v2885_v30 = vld [vmem:[%s3513_s13 + $0x98] sm:$0xff] }
 0x213   : > { %1357 = vst [vmem:[#allocation2 + $0x8] sm:$0x1] %v1356_v31  ;;  %v1559_v39 = vunpack.c.l.b16 %v1361_v34  ;;  %1713 = vmatpush.bf16.msra.mxu2 %v2858_v61  ;;  %1858 = vmatpush.bf16.msra.mxu3 %v2879_v25  ;;  %v2886_v26 = vld [vmem:[%s3513_s13 + $0xa0] sm:$0xff]  ;;  %v2867_v31 = vld [vmem:[%s3513_s13 + $0x8] sm:$0xff]  ;;  %v2877_v34 = vld [vmem:[%s3513_s13 + $0x58] sm:$0xff] }
 0x214   : > { %v2878_v28 = vld [vmem:[%s3513_s13 + $0x60] sm:$0xff] }
 0x215   : > { %1922 = vmatpush.bf16.msrb.mxu0 %v2870_v21 }
 0x216   : > { %2008 = vmatpush.bf16.msrb.mxu1 %v2886_v26 }
 0x217   : > { %1859 = vmatpush.bf16.msra.mxu3 %v2878_v28 }
 0x219   : > { %v1359_v35 = vld [vmem:[#allocation2 + $0x4] sm:$0xf]  ;;  %1923 = vmatpush.bf16.msrb.mxu0 %v2869_v24 }
 0x21a   : > { %v1399_v37 = vunpack.c.l.b16 %v1359_v35  ;;  %v1360_v38 = vld [vmem:[#allocation2 + $0x8] sm:$0x1]  ;;  %2009 = vmatpush.bf16.msrb.mxu1 %v2885_v30  ;;  %v2884_v35 = vld [vmem:[%s3513_s13 + $0x90] sm:$0xff] }
 0x21b   : > { %v1400_v40 = vunpack.c.l.b16 %v1360_v38  ;;  %1860 = vmatpush.bf16.msra.mxu3 %v2877_v34  ;;  %v2876_v38 = vld [vmem:[%s3513_s13 + $0x50] sm:$0xff] }
 0x21c   : > { %v1401_v41 = vpack.c.b16 %v1399_v37, %v1398_v36  ;;  %v1560_v42 = vpack.c.b16 %v1399_v37, %v1559_v39  ;;  %v2923_v36 = vld [vmem:[%s581_s24] ss:$0 sm:$0xff] }
 0x21d   : > { %v1402_v43 = vpack.c.b16 %v1400_v40, %v1400_v40  ;;  %1924 = vmatpush.bf16.msrb.mxu0 %v2868_v27  ;;  %v2866_v37 = vld [vmem:[%s3513_s13] sm:$0xff] }
 0x21e   : > { %1535 = vmatmul.bf16.vlgmr.msra.gmra.mxu0 %v1401_v41  ;;  %v1561_v44 = vrot.slane %v1560_v42, 1  ;;  %v1406_v45 = vshll.u32 %v1401_v41, 16  ;;  %v1404_v48 = vshrl.u32 %v1401_v41, 16  ;;  %2010 = vmatpush.bf16.msrb.mxu1 %v2884_v35  ;;  %v2883_v41 = vld [vmem:[%s3513_s13 + $0x88] sm:$0xff] }
 0x21f   : > { %v1562_v46 = vrot.slane %v1402_v43, 1  ;;  %v1411_v47 = vshll.u32 %v1402_v43, 16  ;;  %1861 = vmatpush.bf16.msra.mxu3 %v2876_v38  ;;  %v2875_v42 = vld [vmem:[%s3513_s13 + $0x48] sm:$0xff]  ;;  %v2882_v43 = vld [vmem:[%s3513_s13 + $0x80] sm:$0xff] }
 0x220   : > { %v1408_v49 = vrot.slane %v1406_v45, 1 }
 0x221   : > { %v1563_v50 = vsel %vm848_vm9, %v1561_v44, %v1562_v46  ;;  %v1413_v52 = vrot.slane %v1411_v47, 1  ;;  %1925 = vmatpush.bf16.msrb.mxu0 %v2867_v31  ;;  %v2874_v44 = vld [vmem:[%s3513_s13 + $0x40] sm:$0xff] }
 0x222   : > { %1621 = vmatmul.bf16.vlgmr.msra.gmra.mxu1 %v1563_v50  ;;  %v1409_v51 = vor.u32 %v1408_v49, %v1404_v48 }
 0x223   : > { %2011 = vmatpush.bf16.msrb.mxu1 %v2883_v41  ;;  %1862 = vmatpush.bf16.msra.mxu3 %v2875_v42 }
 0x224   : > { %v1414_v53 = vsel %vm689_vm10, %v1409_v51, %v1413_v52 }
 0x225   : > { %1472 = vmatmul.bf16.vlgmr.msrb.gmra.mxu3 %v1414_v53  ;;  %1926 = vmatpush.bf16.msrb.mxu0 %v2866_v37 }
 0x227   : > { %2012 = vmatpush.bf16.msrb.mxu1 %v2882_v43  ;;  %1863 = vmatpush.bf16.msra.mxu3 %v2874_v44 }
 0x29b   : > { %v1536_v62 = vpop.f32.mrf.mxu0 }
 0x29f   : > { %v1622_v63 = vpop.f32.mrf.mxu1 }
 0x2a3   : > { %v1538_v4 = vpop.f32.mrf.mxu0 }
 0x2a7   : > { %v1624_v7 = vpop.f32.mrf.mxu1 }
 0x2a8   : > { %v1473_v0 = vpop.f32.mrf.mxu3 }
 0x2a9   : > { %v1537_v1 = vadd.f32 %v1536_v62, %v1473_v0  ;;  %v1747_v62 = vld [vmem:[#allocation2 + $0x8] sm:$0x1] }
 0x2ab   : > { %v1627_v2 = vadd.f32 %v1622_v63, %v1537_v1 }
 0x2ad   : > { %v1633_v8 = vadd.f32 %v2922_v3, %v1627_v2 }
 0x2af   : > { %v1635_v12 = vmax.f32 %v1633_v8, 0.0 }
 0x2b0   : > { %v1475_v5 = vpop.f32.mrf.mxu3 }
 0x2b1   : > { %v1539_v6 = vadd.f32 %v1538_v4, %v1475_v5 }
 0x2b3   : > { %v1628_v9 = vadd.f32 %v1624_v7, %v1539_v6 }
 0x2b5   : > { %v1634_v10 = vadd.f32 %v2922_v3, %v1628_v9 }
 0x2b7   : > { %v1636_v13 = vmax.f32 %v1634_v10, 0.0 }
 0x2b9   : > { %v1637_v14 = vpack.c.bf16 %v1636_v13, %v1635_v12 }
 0x2bb   : > { %1714 = vmatmul.bf16.vlgmr.msra.gmra.mxu2 %v1637_v14 }
 0x33e   : > { %v1715_v39 = vpop.f32.mrf.mxu2 }
 0x33f   : > { %v1716_v40 = vadd.f32 %v2923_v36, %v1715_v39 }
 0x341   : > { %2929 = vtanh.f32 %v1716_v40 }
 0x346   : > { %v1717_v45 = vpop.f32.mrf.mxu2 }
 0x347   : > { %v2930_v46 = vpop.eup %2929  ;;  %v1718_v47 = vadd.f32 %v2923_v36, %v1717_v45 }
 0x348   : > { %v1722_v48 = vpack.c.bf16 %v2930_v46, %v2930_v46 }
 0x349   : > { %2931 = vtanh.f32 %v1718_v47 }
 0x34a   : > { %v1725_v49 = vshrl.u32 %v1722_v48, 16  ;;  %v1728_v51 = vshll.u32 %v1722_v48, 16 }
 0x34c   : > { %v1727_v50 = vrot.slane %v1725_v49, 7 }
 0x34e   : > { %v1730_v52 = vor.u32 %v1728_v51, %v1727_v50  ;;  %v1731_v59 = vrot.slane %v1727_v50, 4 }
 0x34f   : > { %v2932_v53 = vpop.eup %2931 }
 0x350   : > { %v1744_v54 = vsel %vm3118_vm8, %v1730_v52, %v3368_v32  ;;  %v1723_v55 = vpack.c.bf16 %v2932_v53, %v2932_v53 }
 0x351   : > { %1745 = vst [vmem:[#allocation2] sm:$0xf] %v1744_v54 }
 0x352   : > { %v1733_v56 = vshrl.u32 %v1723_v55, 16  ;;  %v1736_v58 = vshll.u32 %v1723_v55, 16 }
 0x354   : > { %v1735_v57 = vrot.slane %v1733_v56, 7 }
 0x356   : > { %v1738_v60 = vor.u32 %v1736_v58, %v1735_v57  ;;  %v1740_v61 = vrot.slane %v1735_v57, 4 }
 0x358   : > { %v1739_v63 = vsel %vm3109_vm7, %v1731_v59, %v1738_v60  ;;  %v1748_v0 = vsel %vm3085_vm3, %v1740_v61, %v1747_v62  ;;  %v2909_v3 = vld [vmem:[#allocation2] sm:$0xe] }
 0x359   : > { %1746 = vst [vmem:[#allocation2 + $0x4] sm:$0xf] %v1739_v63 }
 0x35a   : > { %1749 = vst [vmem:[#allocation2 + $0x8] sm:$0x1] %v1748_v0 }
 0x360   : > { %v2899_v1 = vld [vmem:[#allocation2] sm:$0xff]  }
 0x361   : > { %v2908_v33 = vld [vmem:[#allocation2] sm:$0xf0]  ;;  %v1798_v32 = vshll.u32 %v2899_v1, 16  ;;  %1927 = vmatmul.bf16.vlgmr.msrb.gmra.mxu0 %v2899_v1  ;;  %v1752_v2 = vld [vmem:[#allocation2 + $0x8] sm:$0x1]  ;;  %v1796_v8 = vshrl.u32 %v2899_v1, 16 }
 0x362   : > { %v1792_v4 = vunpack.c.l.b16 %v1752_v2  ;;  %v2910_v5 = vor.u32 %v2909_v3, %v2908_v33 }
 0x363   : > { %v1800_v6 = vrot.slane %v1798_v32, 1 }
 0x364   : > { %v1794_v7 = vpack.c.b16 %v1792_v4, %v1792_v4  ;;  %v1953_v9 = vrot.slane %v2910_v5, 1 }
 0x365   : > { %v1801_v12 = vor.u32 %v1800_v6, %v1796_v8 }
 0x366   : > { %v1954_v29 = vrot.slane %v1794_v7, 1  ;;  %v1803_v10 = vshll.u32 %v1794_v7, 16 }
 0x368   : > { %v1955_v11 = vsel %vm848_vm9, %v1953_v9, %v1954_v29  ;;  %v1805_v13 = vrot.slane %v1803_v10, 1 }
 0x369   : > { %2013 = vmatmul.bf16.vlgmr.msrb.gmra.mxu1 %v1955_v11 }
 0x36a   : > { %v1806_v14 = vsel %vm689_vm10, %v1801_v12, %v1805_v13 }
 0x36b   : > { %1864 = vmatmul.bf16.vlgmr.msra.gmra.mxu3 %v1806_v14 }
 0x3de   : > { %v1928_v15 = vpop.f32.mrf.mxu0 }
 0x3e6   : > { %v2014_v16 = vpop.f32.mrf.mxu1  ;;  %v1930_v22 = vpop.f32.mrf.mxu0 }
 0x3ee   : > { %v1865_v17 = vpop.f32.mrf.mxu3  ;;  %v2016_v25 = vpop.f32.mrf.mxu1 }
 0x3ef   : > { %v1929_v18 = vadd.f32 %v1928_v15, %v1865_v17 }
 0x3f1   : > { %v2019_v20 = vadd.f32 %v2014_v16, %v1929_v18 }
 0x3f3   : > { %v2025_v21 = vadd.f32 %v2924_v19, %v2019_v20 }
 0x3f5   : > { %2027 = vst [vmem:[%s586_s1] sm:$0xff] %v2025_v21 }
 0x3f6   : > { %v1867_v23 = vpop.f32.mrf.mxu3 }
 0x3f7   : > { %v1931_v24 = vadd.f32 %v1930_v22, %v1867_v23 }
 0x3f9   : > { %v2020_v26 = vadd.f32 %v2016_v25, %v1931_v24 }
 0x3fb   : > { %v2026_v27 = vadd.f32 %v2924_v19, %v2020_v26 }
 0x3fd   : > { %2028 = vst [vmem:[%s586_s1 + $0x8] sm:$0xff] %v2026_v27 }
 0x3fe PF: > { %s29_s27 = sadd.s32 1, %s2939_s27  }
 0x3ff   : > { %p26_p5 = scmp.ge.s32.totalorder %s29_s27, 4  }
 0x401   :  { %28 = sbr.rel (!%p26_p5) target bundleno = 10 (0xa), region = 147 }

</bundles_post_ra>
